<compile_context>
chip_gen: v5e
topology: v5e:2x2
jax: 0.10.0
libtpu: 0.0.40
codegen_flags: <defaults>
</compile_context>

<pallas_src>
import functools

import jax
import jax.numpy as jnp
from jax.experimental import pallas as pl
from jax.experimental.pallas import tpu as pltpu


# ----------------------------- Pallas kernel -------------------------------

def _fused_lstm_kernel(x_ref, *refs, num_layers, T, B, H, P):
    """Fused multi-layer LSTM + FC head (single invocation, no grid).

    x_ref : (T*B, D_in) bf16, time-major rows (row = t*B + b)
    refs  : [w_ih_0^T, w_hh_0^T, b_0, ..., w_ih_{L-1}^T, w_hh_{L-1}^T, b_{L-1},
             fc_w^T, fc_b, out_ref, hs_scratch]
      w_ih_l^T : (D_l, 4H) bf16    w_hh_l^T : (H, 4H) bf16    b_l : (1, 4H) f32
      fc_w^T   : (H, O) bf16       fc_b     : (1, O) f32
      out_ref  : (P*B, O) f32, time-major rows (row = p*B + b)
      hs_scratch (VMEM): (T*B, H) f32 hidden-sequence handoff between layers
    """
    n_w = 3 * num_layers
    fc_w = refs[n_w][...]            # (H, O)   bf16
    fc_b = refs[n_w + 1][...]        # (1, O)   f32
    out_ref = refs[n_w + 2]          # (P*B, O) f32
    hs_ref = refs[n_w + 3]           # (T*B, H) f32 scratch

    cur2d = x_ref[...]               # (T*B, D_in) time-major

    for l in range(num_layers):
        w_ih = refs[3 * l][...]      # (D_l, 4H) bf16
        w_hh = refs[3 * l + 1][...]  # (H, 4H)   bf16
        b = refs[3 * l + 2][...]     # (1, 4H)   f32
        last = (l == num_layers - 1)

        # Hoisted input projection: ONE MXU matmul over all (time, batch) rows.
        gates_x = jnp.dot(cur2d.astype(w_ih.dtype), w_ih,
                          preferred_element_type=jnp.float32) + b   # (T*B, 4H) f32

        h = jnp.zeros((B, H), jnp.float32)
        c = jnp.zeros((B, H), jnp.float32)

        # T is a small compile-time constant -> fully unrolled recurrence.
        for t in range(T):
            # Contiguous time-major row slice; only h @ W_hh stays on the serial path.
            g = gates_x[t * B:(t + 1) * B, :] + jnp.dot(
                h.astype(w_hh.dtype), w_hh, preferred_element_type=jnp.float32)
            sig = jax.nn.sigmoid(g)          # full-vreg EUP op (i, f, o gates)
            tnh = jnp.tanh(g)                # full-vreg EUP op (g gate)
            c = sig[:, H:2 * H] * c + sig[:, 0:H] * tnh[:, 2 * H:3 * H]
            h = sig[:, 3 * H:4 * H] * jnp.tanh(c)
            if (not last) or (t >= T - P):
                # Contiguous time-major store of this step's hidden state.
                hs_ref[t * B:(t + 1) * B, :] = h

        if not last:
            # Next layer's input: the whole time-major hidden sequence.
            cur2d = hs_ref[...]                                        # (T*B, H)
        else:
            # Fused FC head: one matmul + one store over the last P steps.
            h_tail = hs_ref[(T - P) * B:T * B, :]                      # (P*B, H)
            out_ref[...] = (jnp.dot(h_tail.astype(fc_w.dtype), fc_w,
                                    preferred_element_type=jnp.float32) + fc_b)


# ------------------------------ wrappers ------------------------------------

def _vmem():
    return pl.BlockSpec(memory_space=pltpu.MemorySpace.VMEM)


def init_params(key, input_size, hidden_size, num_layers, output_size):
    """Deterministic init mimicking PyTorch's uniform(-1/sqrt(H), 1/sqrt(H)).

    Matmul weights are stored transposed and in bf16 (MXU-friendly on v6e/v7x);
    biases stay f32 and gate/cell math stays f32 inside the kernel.
    """
    bound = 1.0 / jnp.sqrt(jnp.float32(hidden_size))
    layers = []
    for l in range(num_layers):
        d_in = input_size if l == 0 else hidden_size
        key, k1, k2, k3, k4 = jax.random.split(key, 5)
        w_ih = jax.random.uniform(k1, (4 * hidden_size, d_in), jnp.float32, -bound, bound)
        w_hh = jax.random.uniform(k2, (4 * hidden_size, hidden_size), jnp.float32, -bound, bound)
        b_ih = jax.random.uniform(k3, (4 * hidden_size,), jnp.float32, -bound, bound)
        b_hh = jax.random.uniform(k4, (4 * hidden_size,), jnp.float32, -bound, bound)
        layers.append((w_ih.T.astype(jnp.bfloat16),
                       w_hh.T.astype(jnp.bfloat16),
                       (b_ih + b_hh)[None, :]))
    key, k5, k6 = jax.random.split(key, 3)
    fc_w = jax.random.uniform(k5, (output_size, hidden_size), jnp.float32, -bound, bound)
    fc_b = jax.random.uniform(k6, (output_size,), jnp.float32, -bound, bound)
    return {"layers": layers,
            "fc_w_t": fc_w.T.astype(jnp.bfloat16),
            "fc_b": fc_b[None, :]}


@functools.partial(jax.jit, static_argnames=("num_layers", "pred_len"))
def lstm_forward(x_enc, params, *, num_layers, pred_len):
    """Equivalent of LSTM.forward(x_enc) with zero initial (h0, c0)."""
    B, T, D = x_enc.shape
    H = params["layers"][0][1].shape[0]          # w_hh^T is (H, 4H)
    O = params["fc_w_t"].shape[1]
    assert pred_len <= T

    # Time-major flatten ONCE in the wrapper (layout plumbing, not compute).
    x_tm = jnp.transpose(x_enc, (1, 0, 2)).reshape(T * B, D).astype(jnp.bfloat16)

    flat = [x_tm]
    for l in range(num_layers):
        flat.extend(params["layers"][l])          # w_ih^T, w_hh^T, b
    flat.append(params["fc_w_t"])
    flat.append(params["fc_b"])

    kernel = functools.partial(_fused_lstm_kernel, num_layers=num_layers,
                               T=T, B=B, H=H, P=pred_len)
    out2d = pl.pallas_call(
        kernel,
        out_shape=jax.ShapeDtypeStruct((pred_len * B, O), jnp.float32),
        in_specs=[_vmem()] * len(flat),
        out_specs=_vmem(),
        scratch_shapes=[pltpu.VMEM((T * B, H), jnp.float32)],
    )(*flat)

    # (P*B, O) time-major -> (B, P, O) batch-major, outside the kernel.
    return jnp.transpose(out2d.reshape(pred_len, B, O), (1, 0, 2))


# ------------------------------ main ----------------------------------------

if __name__ == "__main__":
    # small shapes consistent with the module
    B, T = 2, 8
    input_size, hidden_size, num_layers = 4, 32, 2
    output_size, pred_len = 4, 4

    key = jax.random.PRNGKey(0)
    key, xk = jax.random.split(key)
    x_enc = jax.random.normal(xk, (B, T, input_size), jnp.float32)

    params = init_params(key, input_size, hidden_size, num_layers, output_size)

    out = lstm_forward(x_enc, params, num_layers=num_layers, pred_len=pred_len)
    jax.block_until_ready(out)

    assert out.shape == (B, pred_len, output_size), out.shape
    print("KERNEL_OK")
</pallas_src>

<mosaic_0001>
module attributes {stable_mosaic.version = 11 : i64} {
  func.func @_fused_lstm_kernel(%arg0: memref<16x4xbf16, #tpu.memory_space<vmem>>, %arg1: memref<4x128xbf16, #tpu.memory_space<vmem>>, %arg2: memref<32x128xbf16, #tpu.memory_space<vmem>>, %arg3: memref<1x128xf32, #tpu.memory_space<vmem>>, %arg4: memref<32x128xbf16, #tpu.memory_space<vmem>>, %arg5: memref<32x128xbf16, #tpu.memory_space<vmem>>, %arg6: memref<1x128xf32, #tpu.memory_space<vmem>>, %arg7: memref<32x4xbf16, #tpu.memory_space<vmem>>, %arg8: memref<1x4xf32, #tpu.memory_space<vmem>>, %arg9: memref<8x4xf32, #tpu.memory_space<vmem>>, %arg10: memref<16x32xf32, #tpu.memory_space<vmem>>) attributes {dimension_semantics = [], scalar_prefetch = 0 : i64, scratch_operands = 1 : i64, tpu.core_type = #tpu.core_type<tc>} {
    %c0 = arith.constant 0 : index
    %c0_0 = arith.constant 0 : index
    %0 = vector.load %arg7[%c0, %c0_0] : memref<32x4xbf16, #tpu.memory_space<vmem>>, vector<32x4xbf16>
    %c0_1 = arith.constant 0 : index
    %c0_2 = arith.constant 0 : index
    %1 = vector.load %arg8[%c0_1, %c0_2] : memref<1x4xf32, #tpu.memory_space<vmem>>, vector<1x4xf32>
    %c0_3 = arith.constant 0 : index
    %c0_4 = arith.constant 0 : index
    %2 = vector.load %arg0[%c0_3, %c0_4] : memref<16x4xbf16, #tpu.memory_space<vmem>>, vector<16x4xbf16>
    %c0_5 = arith.constant 0 : index
    %c0_6 = arith.constant 0 : index
    %3 = vector.load %arg1[%c0_5, %c0_6] : memref<4x128xbf16, #tpu.memory_space<vmem>>, vector<4x128xbf16>
    %c0_7 = arith.constant 0 : index
    %c0_8 = arith.constant 0 : index
    %4 = vector.load %arg2[%c0_7, %c0_8] : memref<32x128xbf16, #tpu.memory_space<vmem>>, vector<32x128xbf16>
    %c0_9 = arith.constant 0 : index
    %c0_10 = arith.constant 0 : index
    %5 = vector.load %arg3[%c0_9, %c0_10] : memref<1x128xf32, #tpu.memory_space<vmem>>, vector<1x128xf32>
    %cst = arith.constant dense<0.000000e+00> : vector<16x128xf32>
    %6 = tpu.matmul %2, %3, %cst {dimension_numbers = #tpu.dot_dimension_numbers<[1], [0], [0], [1], [0, 0, 1, 1], [], []>} : vector<16x4xbf16>, vector<4x128xbf16>, vector<16x128xf32> -> vector<16x128xf32>
    %7 = vector.broadcast %5 : vector<1x128xf32> to vector<16x128xf32>
    %8 = arith.addf %6, %7 : vector<16x128xf32>
    %cst_11 = arith.constant 0.000000e+00 : f32
    %9 = vector.broadcast %cst_11 : f32 to vector<2x32xf32>
    %cst_12 = arith.constant 0.000000e+00 : f32
    %10 = vector.broadcast %cst_12 : f32 to vector<2x32xf32>
    %11 = vector.extract_strided_slice %8 {offsets = [0, 0], sizes = [2, 128], strides = [1, 1]} : vector<16x128xf32> to vector<2x128xf32>
    %12 = arith.truncf %9 : vector<2x32xf32> to vector<2x32xbf16>
    %cst_13 = arith.constant dense<0.000000e+00> : vector<2x128xf32>
    %13 = tpu.matmul %12, %4, %cst_13 {dimension_numbers = #tpu.dot_dimension_numbers<[1], [0], [0], [1], [0, 0, 1, 1], [], []>} : vector<2x32xbf16>, vector<32x128xbf16>, vector<2x128xf32> -> vector<2x128xf32>
    %14 = arith.addf %11, %13 : vector<2x128xf32>
    %15 = arith.negf %14 : vector<2x128xf32>
    %16 = math.exp %15 : vector<2x128xf32>
    %cst_14 = arith.constant 1.000000e+00 : f32
    %17 = vector.broadcast %cst_14 : f32 to vector<2x128xf32>
    %18 = arith.addf %17, %16 : vector<2x128xf32>
    %19 = arith.divf %17, %18 : vector<2x128xf32>
    %20 = math.tanh %14 : vector<2x128xf32>
    %21 = vector.extract_strided_slice %19 {offsets = [0, 32], sizes = [2, 32], strides = [1, 1]} : vector<2x128xf32> to vector<2x32xf32>
    %22 = arith.mulf %21, %10 : vector<2x32xf32>
    %23 = vector.extract_strided_slice %19 {offsets = [0, 0], sizes = [2, 32], strides = [1, 1]} : vector<2x128xf32> to vector<2x32xf32>
    %24 = vector.extract_strided_slice %20 {offsets = [0, 64], sizes = [2, 32], strides = [1, 1]} : vector<2x128xf32> to vector<2x32xf32>
    %25 = arith.mulf %23, %24 : vector<2x32xf32>
    %26 = arith.addf %22, %25 : vector<2x32xf32>
    %27 = vector.extract_strided_slice %19 {offsets = [0, 96], sizes = [2, 32], strides = [1, 1]} : vector<2x128xf32> to vector<2x32xf32>
    %28 = math.tanh %26 : vector<2x32xf32>
    %29 = arith.mulf %27, %28 : vector<2x32xf32>
    %c0_15 = arith.constant 0 : index
    %c0_16 = arith.constant 0 : index
    %30 = vector.load %arg10[%c0_15, %c0_16] : memref<16x32xf32, #tpu.memory_space<vmem>>, vector<2x32xf32>
    tpu.vector_store %arg10[%c0_15, %c0_16], %29 {strides = array<i32>} : memref<16x32xf32, #tpu.memory_space<vmem>>, vector<2x32xf32>,
    %31 = vector.extract_strided_slice %8 {offsets = [2, 0], sizes = [2, 128], strides = [1, 1]} : vector<16x128xf32> to vector<2x128xf32>
    %32 = arith.truncf %29 : vector<2x32xf32> to vector<2x32xbf16>
    %cst_17 = arith.constant dense<0.000000e+00> : vector<2x128xf32>
    %33 = tpu.matmul %32, %4, %cst_17 {dimension_numbers = #tpu.dot_dimension_numbers<[1], [0], [0], [1], [0, 0, 1, 1], [], []>} : vector<2x32xbf16>, vector<32x128xbf16>, vector<2x128xf32> -> vector<2x128xf32>
    %34 = arith.addf %31, %33 : vector<2x128xf32>
    %35 = arith.negf %34 : vector<2x128xf32>
    %36 = math.exp %35 : vector<2x128xf32>
    %cst_18 = arith.constant 1.000000e+00 : f32
    %37 = vector.broadcast %cst_18 : f32 to vector<2x128xf32>
    %38 = arith.addf %37, %36 : vector<2x128xf32>
    %39 = arith.divf %37, %38 : vector<2x128xf32>
    %40 = math.tanh %34 : vector<2x128xf32>
    %41 = vector.extract_strided_slice %39 {offsets = [0, 32], sizes = [2, 32], strides = [1, 1]} : vector<2x128xf32> to vector<2x32xf32>
    %42 = arith.mulf %41, %26 : vector<2x32xf32>
    %43 = vector.extract_strided_slice %39 {offsets = [0, 0], sizes = [2, 32], strides = [1, 1]} : vector<2x128xf32> to vector<2x32xf32>
    %44 = vector.extract_strided_slice %40 {offsets = [0, 64], sizes = [2, 32], strides = [1, 1]} : vector<2x128xf32> to vector<2x32xf32>
    %45 = arith.mulf %43, %44 : vector<2x32xf32>
    %46 = arith.addf %42, %45 : vector<2x32xf32>
    %47 = vector.extract_strided_slice %39 {offsets = [0, 96], sizes = [2, 32], strides = [1, 1]} : vector<2x128xf32> to vector<2x32xf32>
    %48 = math.tanh %46 : vector<2x32xf32>
    %49 = arith.mulf %47, %48 : vector<2x32xf32>
    %c2 = arith.constant 2 : index
    %c0_19 = arith.constant 0 : index
    %50 = vector.load %arg10[%c2, %c0_19] : memref<16x32xf32, #tpu.memory_space<vmem>>, vector<2x32xf32>
    tpu.vector_store %arg10[%c2, %c0_19], %49 {strides = array<i32>} : memref<16x32xf32, #tpu.memory_space<vmem>>, vector<2x32xf32>,
    %51 = vector.extract_strided_slice %8 {offsets = [4, 0], sizes = [2, 128], strides = [1, 1]} : vector<16x128xf32> to vector<2x128xf32>
    %52 = arith.truncf %49 : vector<2x32xf32> to vector<2x32xbf16>
    %cst_20 = arith.constant dense<0.000000e+00> : vector<2x128xf32>
    %53 = tpu.matmul %52, %4, %cst_20 {dimension_numbers = #tpu.dot_dimension_numbers<[1], [0], [0], [1], [0, 0, 1, 1], [], []>} : vector<2x32xbf16>, vector<32x128xbf16>, vector<2x128xf32> -> vector<2x128xf32>
    %54 = arith.addf %51, %53 : vector<2x128xf32>
    %55 = arith.negf %54 : vector<2x128xf32>
    %56 = math.exp %55 : vector<2x128xf32>
    %cst_21 = arith.constant 1.000000e+00 : f32
    %57 = vector.broadcast %cst_21 : f32 to vector<2x128xf32>
    %58 = arith.addf %57, %56 : vector<2x128xf32>
    %59 = arith.divf %57, %58 : vector<2x128xf32>
    %60 = math.tanh %54 : vector<2x128xf32>
    %61 = vector.extract_strided_slice %59 {offsets = [0, 32], sizes = [2, 32], strides = [1, 1]} : vector<2x128xf32> to vector<2x32xf32>
    %62 = arith.mulf %61, %46 : vector<2x32xf32>
    %63 = vector.extract_strided_slice %59 {offsets = [0, 0], sizes = [2, 32], strides = [1, 1]} : vector<2x128xf32> to vector<2x32xf32>
    %64 = vector.extract_strided_slice %60 {offsets = [0, 64], sizes = [2, 32], strides = [1, 1]} : vector<2x128xf32> to vector<2x32xf32>
    %65 = arith.mulf %63, %64 : vector<2x32xf32>
    %66 = arith.addf %62, %65 : vector<2x32xf32>
    %67 = vector.extract_strided_slice %59 {offsets = [0, 96], sizes = [2, 32], strides = [1, 1]} : vector<2x128xf32> to vector<2x32xf32>
    %68 = math.tanh %66 : vector<2x32xf32>
    %69 = arith.mulf %67, %68 : vector<2x32xf32>
    %c4 = arith.constant 4 : index
    %c0_22 = arith.constant 0 : index
    %70 = vector.load %arg10[%c4, %c0_22] : memref<16x32xf32, #tpu.memory_space<vmem>>, vector<2x32xf32>
    tpu.vector_store %arg10[%c4, %c0_22], %69 {strides = array<i32>} : memref<16x32xf32, #tpu.memory_space<vmem>>, vector<2x32xf32>,
    %71 = vector.extract_strided_slice %8 {offsets = [6, 0], sizes = [2, 128], strides = [1, 1]} : vector<16x128xf32> to vector<2x128xf32>
    %72 = arith.truncf %69 : vector<2x32xf32> to vector<2x32xbf16>
    %cst_23 = arith.constant dense<0.000000e+00> : vector<2x128xf32>
    %73 = tpu.matmul %72, %4, %cst_23 {dimension_numbers = #tpu.dot_dimension_numbers<[1], [0], [0], [1], [0, 0, 1, 1], [], []>} : vector<2x32xbf16>, vector<32x128xbf16>, vector<2x128xf32> -> vector<2x128xf32>
    %74 = arith.addf %71, %73 : vector<2x128xf32>
    %75 = arith.negf %74 : vector<2x128xf32>
    %76 = math.exp %75 : vector<2x128xf32>
    %cst_24 = arith.constant 1.000000e+00 : f32
    %77 = vector.broadcast %cst_24 : f32 to vector<2x128xf32>
    %78 = arith.addf %77, %76 : vector<2x128xf32>
    %79 = arith.divf %77, %78 : vector<2x128xf32>
    %80 = math.tanh %74 : vector<2x128xf32>
    %81 = vector.extract_strided_slice %79 {offsets = [0, 32], sizes = [2, 32], strides = [1, 1]} : vector<2x128xf32> to vector<2x32xf32>
    %82 = arith.mulf %81, %66 : vector<2x32xf32>
    %83 = vector.extract_strided_slice %79 {offsets = [0, 0], sizes = [2, 32], strides = [1, 1]} : vector<2x128xf32> to vector<2x32xf32>
    %84 = vector.extract_strided_slice %80 {offsets = [0, 64], sizes = [2, 32], strides = [1, 1]} : vector<2x128xf32> to vector<2x32xf32>
    %85 = arith.mulf %83, %84 : vector<2x32xf32>
    %86 = arith.addf %82, %85 : vector<2x32xf32>
    %87 = vector.extract_strided_slice %79 {offsets = [0, 96], sizes = [2, 32], strides = [1, 1]} : vector<2x128xf32> to vector<2x32xf32>
    %88 = math.tanh %86 : vector<2x32xf32>
    %89 = arith.mulf %87, %88 : vector<2x32xf32>
    %c6 = arith.constant 6 : index
    %c0_25 = arith.constant 0 : index
    %90 = vector.load %arg10[%c6, %c0_25] : memref<16x32xf32, #tpu.memory_space<vmem>>, vector<2x32xf32>
    tpu.vector_store %arg10[%c6, %c0_25], %89 {strides = array<i32>} : memref<16x32xf32, #tpu.memory_space<vmem>>, vector<2x32xf32>,
    %91 = vector.extract_strided_slice %8 {offsets = [8, 0], sizes = [2, 128], strides = [1, 1]} : vector<16x128xf32> to vector<2x128xf32>
    %92 = arith.truncf %89 : vector<2x32xf32> to vector<2x32xbf16>
    %cst_26 = arith.constant dense<0.000000e+00> : vector<2x128xf32>
    %93 = tpu.matmul %92, %4, %cst_26 {dimension_numbers = #tpu.dot_dimension_numbers<[1], [0], [0], [1], [0, 0, 1, 1], [], []>} : vector<2x32xbf16>, vector<32x128xbf16>, vector<2x128xf32> -> vector<2x128xf32>
    %94 = arith.addf %91, %93 : vector<2x128xf32>
    %95 = arith.negf %94 : vector<2x128xf32>
    %96 = math.exp %95 : vector<2x128xf32>
    %cst_27 = arith.constant 1.000000e+00 : f32
    %97 = vector.broadcast %cst_27 : f32 to vector<2x128xf32>
    %98 = arith.addf %97, %96 : vector<2x128xf32>
    %99 = arith.divf %97, %98 : vector<2x128xf32>
    %100 = math.tanh %94 : vector<2x128xf32>
    %101 = vector.extract_strided_slice %99 {offsets = [0, 32], sizes = [2, 32], strides = [1, 1]} : vector<2x128xf32> to vector<2x32xf32>
    %102 = arith.mulf %101, %86 : vector<2x32xf32>
    %103 = vector.extract_strided_slice %99 {offsets = [0, 0], sizes = [2, 32], strides = [1, 1]} : vector<2x128xf32> to vector<2x32xf32>
    %104 = vector.extract_strided_slice %100 {offsets = [0, 64], sizes = [2, 32], strides = [1, 1]} : vector<2x128xf32> to vector<2x32xf32>
    %105 = arith.mulf %103, %104 : vector<2x32xf32>
    %106 = arith.addf %102, %105 : vector<2x32xf32>
    %107 = vector.extract_strided_slice %99 {offsets = [0, 96], sizes = [2, 32], strides = [1, 1]} : vector<2x128xf32> to vector<2x32xf32>
    %108 = math.tanh %106 : vector<2x32xf32>
    %109 = arith.mulf %107, %108 : vector<2x32xf32>
    %c8 = arith.constant 8 : index
    %c0_28 = arith.constant 0 : index
    %110 = vector.load %arg10[%c8, %c0_28] : memref<16x32xf32, #tpu.memory_space<vmem>>, vector<2x32xf32>
    tpu.vector_store %arg10[%c8, %c0_28], %109 {strides = array<i32>} : memref<16x32xf32, #tpu.memory_space<vmem>>, vector<2x32xf32>,
    %111 = vector.extract_strided_slice %8 {offsets = [10, 0], sizes = [2, 128], strides = [1, 1]} : vector<16x128xf32> to vector<2x128xf32>
    %112 = arith.truncf %109 : vector<2x32xf32> to vector<2x32xbf16>
    %cst_29 = arith.constant dense<0.000000e+00> : vector<2x128xf32>
    %113 = tpu.matmul %112, %4, %cst_29 {dimension_numbers = #tpu.dot_dimension_numbers<[1], [0], [0], [1], [0, 0, 1, 1], [], []>} : vector<2x32xbf16>, vector<32x128xbf16>, vector<2x128xf32> -> vector<2x128xf32>
    %114 = arith.addf %111, %113 : vector<2x128xf32>
    %115 = arith.negf %114 : vector<2x128xf32>
    %116 = math.exp %115 : vector<2x128xf32>
    %cst_30 = arith.constant 1.000000e+00 : f32
    %117 = vector.broadcast %cst_30 : f32 to vector<2x128xf32>
    %118 = arith.addf %117, %116 : vector<2x128xf32>
    %119 = arith.divf %117, %118 : vector<2x128xf32>
    %120 = math.tanh %114 : vector<2x128xf32>
    %121 = vector.extract_strided_slice %119 {offsets = [0, 32], sizes = [2, 32], strides = [1, 1]} : vector<2x128xf32> to vector<2x32xf32>
    %122 = arith.mulf %121, %106 : vector<2x32xf32>
    %123 = vector.extract_strided_slice %119 {offsets = [0, 0], sizes = [2, 32], strides = [1, 1]} : vector<2x128xf32> to vector<2x32xf32>
    %124 = vector.extract_strided_slice %120 {offsets = [0, 64], sizes = [2, 32], strides = [1, 1]} : vector<2x128xf32> to vector<2x32xf32>
    %125 = arith.mulf %123, %124 : vector<2x32xf32>
    %126 = arith.addf %122, %125 : vector<2x32xf32>
    %127 = vector.extract_strided_slice %119 {offsets = [0, 96], sizes = [2, 32], strides = [1, 1]} : vector<2x128xf32> to vector<2x32xf32>
    %128 = math.tanh %126 : vector<2x32xf32>
    %129 = arith.mulf %127, %128 : vector<2x32xf32>
    %c10 = arith.constant 10 : index
    %c0_31 = arith.constant 0 : index
    %130 = vector.load %arg10[%c10, %c0_31] : memref<16x32xf32, #tpu.memory_space<vmem>>, vector<2x32xf32>
    tpu.vector_store %arg10[%c10, %c0_31], %129 {strides = array<i32>} : memref<16x32xf32, #tpu.memory_space<vmem>>, vector<2x32xf32>,
    %131 = vector.extract_strided_slice %8 {offsets = [12, 0], sizes = [2, 128], strides = [1, 1]} : vector<16x128xf32> to vector<2x128xf32>
    %132 = arith.truncf %129 : vector<2x32xf32> to vector<2x32xbf16>
    %cst_32 = arith.constant dense<0.000000e+00> : vector<2x128xf32>
    %133 = tpu.matmul %132, %4, %cst_32 {dimension_numbers = #tpu.dot_dimension_numbers<[1], [0], [0], [1], [0, 0, 1, 1], [], []>} : vector<2x32xbf16>, vector<32x128xbf16>, vector<2x128xf32> -> vector<2x128xf32>
    %134 = arith.addf %131, %133 : vector<2x128xf32>
    %135 = arith.negf %134 : vector<2x128xf32>
    %136 = math.exp %135 : vector<2x128xf32>
    %cst_33 = arith.constant 1.000000e+00 : f32
    %137 = vector.broadcast %cst_33 : f32 to vector<2x128xf32>
    %138 = arith.addf %137, %136 : vector<2x128xf32>
    %139 = arith.divf %137, %138 : vector<2x128xf32>
    %140 = math.tanh %134 : vector<2x128xf32>
    %141 = vector.extract_strided_slice %139 {offsets = [0, 32], sizes = [2, 32], strides = [1, 1]} : vector<2x128xf32> to vector<2x32xf32>
    %142 = arith.mulf %141, %126 : vector<2x32xf32>
    %143 = vector.extract_strided_slice %139 {offsets = [0, 0], sizes = [2, 32], strides = [1, 1]} : vector<2x128xf32> to vector<2x32xf32>
    %144 = vector.extract_strided_slice %140 {offsets = [0, 64], sizes = [2, 32], strides = [1, 1]} : vector<2x128xf32> to vector<2x32xf32>
    %145 = arith.mulf %143, %144 : vector<2x32xf32>
    %146 = arith.addf %142, %145 : vector<2x32xf32>
    %147 = vector.extract_strided_slice %139 {offsets = [0, 96], sizes = [2, 32], strides = [1, 1]} : vector<2x128xf32> to vector<2x32xf32>
    %148 = math.tanh %146 : vector<2x32xf32>
    %149 = arith.mulf %147, %148 : vector<2x32xf32>
    %c12 = arith.constant 12 : index
    %c0_34 = arith.constant 0 : index
    %150 = vector.load %arg10[%c12, %c0_34] : memref<16x32xf32, #tpu.memory_space<vmem>>, vector<2x32xf32>
    tpu.vector_store %arg10[%c12, %c0_34], %149 {strides = array<i32>} : memref<16x32xf32, #tpu.memory_space<vmem>>, vector<2x32xf32>,
    %151 = vector.extract_strided_slice %8 {offsets = [14, 0], sizes = [2, 128], strides = [1, 1]} : vector<16x128xf32> to vector<2x128xf32>
    %152 = arith.truncf %149 : vector<2x32xf32> to vector<2x32xbf16>
    %cst_35 = arith.constant dense<0.000000e+00> : vector<2x128xf32>
    %153 = tpu.matmul %152, %4, %cst_35 {dimension_numbers = #tpu.dot_dimension_numbers<[1], [0], [0], [1], [0, 0, 1, 1], [], []>} : vector<2x32xbf16>, vector<32x128xbf16>, vector<2x128xf32> -> vector<2x128xf32>
    %154 = arith.addf %151, %153 : vector<2x128xf32>
    %155 = arith.negf %154 : vector<2x128xf32>
    %156 = math.exp %155 : vector<2x128xf32>
    %cst_36 = arith.constant 1.000000e+00 : f32
    %157 = vector.broadcast %cst_36 : f32 to vector<2x128xf32>
    %158 = arith.addf %157, %156 : vector<2x128xf32>
    %159 = arith.divf %157, %158 : vector<2x128xf32>
    %160 = math.tanh %154 : vector<2x128xf32>
    %161 = vector.extract_strided_slice %159 {offsets = [0, 32], sizes = [2, 32], strides = [1, 1]} : vector<2x128xf32> to vector<2x32xf32>
    %162 = arith.mulf %161, %146 : vector<2x32xf32>
    %163 = vector.extract_strided_slice %159 {offsets = [0, 0], sizes = [2, 32], strides = [1, 1]} : vector<2x128xf32> to vector<2x32xf32>
    %164 = vector.extract_strided_slice %160 {offsets = [0, 64], sizes = [2, 32], strides = [1, 1]} : vector<2x128xf32> to vector<2x32xf32>
    %165 = arith.mulf %163, %164 : vector<2x32xf32>
    %166 = arith.addf %162, %165 : vector<2x32xf32>
    %167 = vector.extract_strided_slice %159 {offsets = [0, 96], sizes = [2, 32], strides = [1, 1]} : vector<2x128xf32> to vector<2x32xf32>
    %168 = math.tanh %166 : vector<2x32xf32>
    %169 = arith.mulf %167, %168 : vector<2x32xf32>
    %c14 = arith.constant 14 : index
    %c0_37 = arith.constant 0 : index
    %170 = vector.load %arg10[%c14, %c0_37] : memref<16x32xf32, #tpu.memory_space<vmem>>, vector<2x32xf32>
    tpu.vector_store %arg10[%c14, %c0_37], %169 {strides = array<i32>} : memref<16x32xf32, #tpu.memory_space<vmem>>, vector<2x32xf32>,
    %c0_38 = arith.constant 0 : index
    %c0_39 = arith.constant 0 : index
    %171 = vector.load %arg10[%c0_38, %c0_39] : memref<16x32xf32, #tpu.memory_space<vmem>>, vector<16x32xf32>
    %c0_40 = arith.constant 0 : index
    %c0_41 = arith.constant 0 : index
    %172 = vector.load %arg4[%c0_40, %c0_41] : memref<32x128xbf16, #tpu.memory_space<vmem>>, vector<32x128xbf16>
    %c0_42 = arith.constant 0 : index
    %c0_43 = arith.constant 0 : index
    %173 = vector.load %arg5[%c0_42, %c0_43] : memref<32x128xbf16, #tpu.memory_space<vmem>>, vector<32x128xbf16>
    %c0_44 = arith.constant 0 : index
    %c0_45 = arith.constant 0 : index
    %174 = vector.load %arg6[%c0_44, %c0_45] : memref<1x128xf32, #tpu.memory_space<vmem>>, vector<1x128xf32>
    %175 = arith.truncf %171 : vector<16x32xf32> to vector<16x32xbf16>
    %cst_46 = arith.constant dense<0.000000e+00> : vector<16x128xf32>
    %176 = tpu.matmul %175, %172, %cst_46 {dimension_numbers = #tpu.dot_dimension_numbers<[1], [0], [0], [1], [0, 0, 1, 1], [], []>} : vector<16x32xbf16>, vector<32x128xbf16>, vector<16x128xf32> -> vector<16x128xf32>
    %177 = vector.broadcast %174 : vector<1x128xf32> to vector<16x128xf32>
    %178 = arith.addf %176, %177 : vector<16x128xf32>
    %cst_47 = arith.constant 0.000000e+00 : f32
    %179 = vector.broadcast %cst_47 : f32 to vector<2x32xf32>
    %cst_48 = arith.constant 0.000000e+00 : f32
    %180 = vector.broadcast %cst_48 : f32 to vector<2x32xf32>
    %181 = vector.extract_strided_slice %178 {offsets = [0, 0], sizes = [2, 128], strides = [1, 1]} : vector<16x128xf32> to vector<2x128xf32>
    %182 = arith.truncf %179 : vector<2x32xf32> to vector<2x32xbf16>
    %cst_49 = arith.constant dense<0.000000e+00> : vector<2x128xf32>
    %183 = tpu.matmul %182, %173, %cst_49 {dimension_numbers = #tpu.dot_dimension_numbers<[1], [0], [0], [1], [0, 0, 1, 1], [], []>} : vector<2x32xbf16>, vector<32x128xbf16>, vector<2x128xf32> -> vector<2x128xf32>
    %184 = arith.addf %181, %183 : vector<2x128xf32>
    %185 = arith.negf %184 : vector<2x128xf32>
    %186 = math.exp %185 : vector<2x128xf32>
    %cst_50 = arith.constant 1.000000e+00 : f32
    %187 = vector.broadcast %cst_50 : f32 to vector<2x128xf32>
    %188 = arith.addf %187, %186 : vector<2x128xf32>
    %189 = arith.divf %187, %188 : vector<2x128xf32>
    %190 = math.tanh %184 : vector<2x128xf32>
    %191 = vector.extract_strided_slice %189 {offsets = [0, 32], sizes = [2, 32], strides = [1, 1]} : vector<2x128xf32> to vector<2x32xf32>
    %192 = arith.mulf %191, %180 : vector<2x32xf32>
    %193 = vector.extract_strided_slice %189 {offsets = [0, 0], sizes = [2, 32], strides = [1, 1]} : vector<2x128xf32> to vector<2x32xf32>
    %194 = vector.extract_strided_slice %190 {offsets = [0, 64], sizes = [2, 32], strides = [1, 1]} : vector<2x128xf32> to vector<2x32xf32>
    %195 = arith.mulf %193, %194 : vector<2x32xf32>
    %196 = arith.addf %192, %195 : vector<2x32xf32>
    %197 = vector.extract_strided_slice %189 {offsets = [0, 96], sizes = [2, 32], strides = [1, 1]} : vector<2x128xf32> to vector<2x32xf32>
    %198 = math.tanh %196 : vector<2x32xf32>
    %199 = arith.mulf %197, %198 : vector<2x32xf32>
    %200 = vector.extract_strided_slice %178 {offsets = [2, 0], sizes = [2, 128], strides = [1, 1]} : vector<16x128xf32> to vector<2x128xf32>
    %201 = arith.truncf %199 : vector<2x32xf32> to vector<2x32xbf16>
    %cst_51 = arith.constant dense<0.000000e+00> : vector<2x128xf32>
    %202 = tpu.matmul %201, %173, %cst_51 {dimension_numbers = #tpu.dot_dimension_numbers<[1], [0], [0], [1], [0, 0, 1, 1], [], []>} : vector<2x32xbf16>, vector<32x128xbf16>, vector<2x128xf32> -> vector<2x128xf32>
    %203 = arith.addf %200, %202 : vector<2x128xf32>
    %204 = arith.negf %203 : vector<2x128xf32>
    %205 = math.exp %204 : vector<2x128xf32>
    %cst_52 = arith.constant 1.000000e+00 : f32
    %206 = vector.broadcast %cst_52 : f32 to vector<2x128xf32>
    %207 = arith.addf %206, %205 : vector<2x128xf32>
    %208 = arith.divf %206, %207 : vector<2x128xf32>
    %209 = math.tanh %203 : vector<2x128xf32>
    %210 = vector.extract_strided_slice %208 {offsets = [0, 32], sizes = [2, 32], strides = [1, 1]} : vector<2x128xf32> to vector<2x32xf32>
    %211 = arith.mulf %210, %196 : vector<2x32xf32>
    %212 = vector.extract_strided_slice %208 {offsets = [0, 0], sizes = [2, 32], strides = [1, 1]} : vector<2x128xf32> to vector<2x32xf32>
    %213 = vector.extract_strided_slice %209 {offsets = [0, 64], sizes = [2, 32], strides = [1, 1]} : vector<2x128xf32> to vector<2x32xf32>
    %214 = arith.mulf %212, %213 : vector<2x32xf32>
    %215 = arith.addf %211, %214 : vector<2x32xf32>
    %216 = vector.extract_strided_slice %208 {offsets = [0, 96], sizes = [2, 32], strides = [1, 1]} : vector<2x128xf32> to vector<2x32xf32>
    %217 = math.tanh %215 : vector<2x32xf32>
    %218 = arith.mulf %216, %217 : vector<2x32xf32>
    %219 = vector.extract_strided_slice %178 {offsets = [4, 0], sizes = [2, 128], strides = [1, 1]} : vector<16x128xf32> to vector<2x128xf32>
    %220 = arith.truncf %218 : vector<2x32xf32> to vector<2x32xbf16>
    %cst_53 = arith.constant dense<0.000000e+00> : vector<2x128xf32>
    %221 = tpu.matmul %220, %173, %cst_53 {dimension_numbers = #tpu.dot_dimension_numbers<[1], [0], [0], [1], [0, 0, 1, 1], [], []>} : vector<2x32xbf16>, vector<32x128xbf16>, vector<2x128xf32> -> vector<2x128xf32>
    %222 = arith.addf %219, %221 : vector<2x128xf32>
    %223 = arith.negf %222 : vector<2x128xf32>
    %224 = math.exp %223 : vector<2x128xf32>
    %cst_54 = arith.constant 1.000000e+00 : f32
    %225 = vector.broadcast %cst_54 : f32 to vector<2x128xf32>
    %226 = arith.addf %225, %224 : vector<2x128xf32>
    %227 = arith.divf %225, %226 : vector<2x128xf32>
    %228 = math.tanh %222 : vector<2x128xf32>
    %229 = vector.extract_strided_slice %227 {offsets = [0, 32], sizes = [2, 32], strides = [1, 1]} : vector<2x128xf32> to vector<2x32xf32>
    %230 = arith.mulf %229, %215 : vector<2x32xf32>
    %231 = vector.extract_strided_slice %227 {offsets = [0, 0], sizes = [2, 32], strides = [1, 1]} : vector<2x128xf32> to vector<2x32xf32>
    %232 = vector.extract_strided_slice %228 {offsets = [0, 64], sizes = [2, 32], strides = [1, 1]} : vector<2x128xf32> to vector<2x32xf32>
    %233 = arith.mulf %231, %232 : vector<2x32xf32>
    %234 = arith.addf %230, %233 : vector<2x32xf32>
    %235 = vector.extract_strided_slice %227 {offsets = [0, 96], sizes = [2, 32], strides = [1, 1]} : vector<2x128xf32> to vector<2x32xf32>
    %236 = math.tanh %234 : vector<2x32xf32>
    %237 = arith.mulf %235, %236 : vector<2x32xf32>
    %238 = vector.extract_strided_slice %178 {offsets = [6, 0], sizes = [2, 128], strides = [1, 1]} : vector<16x128xf32> to vector<2x128xf32>
    %239 = arith.truncf %237 : vector<2x32xf32> to vector<2x32xbf16>
    %cst_55 = arith.constant dense<0.000000e+00> : vector<2x128xf32>
    %240 = tpu.matmul %239, %173, %cst_55 {dimension_numbers = #tpu.dot_dimension_numbers<[1], [0], [0], [1], [0, 0, 1, 1], [], []>} : vector<2x32xbf16>, vector<32x128xbf16>, vector<2x128xf32> -> vector<2x128xf32>
    %241 = arith.addf %238, %240 : vector<2x128xf32>
    %242 = arith.negf %241 : vector<2x128xf32>
    %243 = math.exp %242 : vector<2x128xf32>
    %cst_56 = arith.constant 1.000000e+00 : f32
    %244 = vector.broadcast %cst_56 : f32 to vector<2x128xf32>
    %245 = arith.addf %244, %243 : vector<2x128xf32>
    %246 = arith.divf %244, %245 : vector<2x128xf32>
    %247 = math.tanh %241 : vector<2x128xf32>
    %248 = vector.extract_strided_slice %246 {offsets = [0, 32], sizes = [2, 32], strides = [1, 1]} : vector<2x128xf32> to vector<2x32xf32>
    %249 = arith.mulf %248, %234 : vector<2x32xf32>
    %250 = vector.extract_strided_slice %246 {offsets = [0, 0], sizes = [2, 32], strides = [1, 1]} : vector<2x128xf32> to vector<2x32xf32>
    %251 = vector.extract_strided_slice %247 {offsets = [0, 64], sizes = [2, 32], strides = [1, 1]} : vector<2x128xf32> to vector<2x32xf32>
    %252 = arith.mulf %250, %251 : vector<2x32xf32>
    %253 = arith.addf %249, %252 : vector<2x32xf32>
    %254 = vector.extract_strided_slice %246 {offsets = [0, 96], sizes = [2, 32], strides = [1, 1]} : vector<2x128xf32> to vector<2x32xf32>
    %255 = math.tanh %253 : vector<2x32xf32>
    %256 = arith.mulf %254, %255 : vector<2x32xf32>
    %257 = vector.extract_strided_slice %178 {offsets = [8, 0], sizes = [2, 128], strides = [1, 1]} : vector<16x128xf32> to vector<2x128xf32>
    %258 = arith.truncf %256 : vector<2x32xf32> to vector<2x32xbf16>
    %cst_57 = arith.constant dense<0.000000e+00> : vector<2x128xf32>
    %259 = tpu.matmul %258, %173, %cst_57 {dimension_numbers = #tpu.dot_dimension_numbers<[1], [0], [0], [1], [0, 0, 1, 1], [], []>} : vector<2x32xbf16>, vector<32x128xbf16>, vector<2x128xf32> -> vector<2x128xf32>
    %260 = arith.addf %257, %259 : vector<2x128xf32>
    %261 = arith.negf %260 : vector<2x128xf32>
    %262 = math.exp %261 : vector<2x128xf32>
    %cst_58 = arith.constant 1.000000e+00 : f32
    %263 = vector.broadcast %cst_58 : f32 to vector<2x128xf32>
    %264 = arith.addf %263, %262 : vector<2x128xf32>
    %265 = arith.divf %263, %264 : vector<2x128xf32>
    %266 = math.tanh %260 : vector<2x128xf32>
    %267 = vector.extract_strided_slice %265 {offsets = [0, 32], sizes = [2, 32], strides = [1, 1]} : vector<2x128xf32> to vector<2x32xf32>
    %268 = arith.mulf %267, %253 : vector<2x32xf32>
    %269 = vector.extract_strided_slice %265 {offsets = [0, 0], sizes = [2, 32], strides = [1, 1]} : vector<2x128xf32> to vector<2x32xf32>
    %270 = vector.extract_strided_slice %266 {offsets = [0, 64], sizes = [2, 32], strides = [1, 1]} : vector<2x128xf32> to vector<2x32xf32>
    %271 = arith.mulf %269, %270 : vector<2x32xf32>
    %272 = arith.addf %268, %271 : vector<2x32xf32>
    %273 = vector.extract_strided_slice %265 {offsets = [0, 96], sizes = [2, 32], strides = [1, 1]} : vector<2x128xf32> to vector<2x32xf32>
    %274 = math.tanh %272 : vector<2x32xf32>
    %275 = arith.mulf %273, %274 : vector<2x32xf32>
    %c8_59 = arith.constant 8 : index
    %c0_60 = arith.constant 0 : index
    %276 = vector.load %arg10[%c8_59, %c0_60] : memref<16x32xf32, #tpu.memory_space<vmem>>, vector<2x32xf32>
    tpu.vector_store %arg10[%c8_59, %c0_60], %275 {strides = array<i32>} : memref<16x32xf32, #tpu.memory_space<vmem>>, vector<2x32xf32>,
    %277 = vector.extract_strided_slice %178 {offsets = [10, 0], sizes = [2, 128], strides = [1, 1]} : vector<16x128xf32> to vector<2x128xf32>
    %278 = arith.truncf %275 : vector<2x32xf32> to vector<2x32xbf16>
    %cst_61 = arith.constant dense<0.000000e+00> : vector<2x128xf32>
    %279 = tpu.matmul %278, %173, %cst_61 {dimension_numbers = #tpu.dot_dimension_numbers<[1], [0], [0], [1], [0, 0, 1, 1], [], []>} : vector<2x32xbf16>, vector<32x128xbf16>, vector<2x128xf32> -> vector<2x128xf32>
    %280 = arith.addf %277, %279 : vector<2x128xf32>
    %281 = arith.negf %280 : vector<2x128xf32>
    %282 = math.exp %281 : vector<2x128xf32>
    %cst_62 = arith.constant 1.000000e+00 : f32
    %283 = vector.broadcast %cst_62 : f32 to vector<2x128xf32>
    %284 = arith.addf %283, %282 : vector<2x128xf32>
    %285 = arith.divf %283, %284 : vector<2x128xf32>
    %286 = math.tanh %280 : vector<2x128xf32>
    %287 = vector.extract_strided_slice %285 {offsets = [0, 32], sizes = [2, 32], strides = [1, 1]} : vector<2x128xf32> to vector<2x32xf32>
    %288 = arith.mulf %287, %272 : vector<2x32xf32>
    %289 = vector.extract_strided_slice %285 {offsets = [0, 0], sizes = [2, 32], strides = [1, 1]} : vector<2x128xf32> to vector<2x32xf32>
    %290 = vector.extract_strided_slice %286 {offsets = [0, 64], sizes = [2, 32], strides = [1, 1]} : vector<2x128xf32> to vector<2x32xf32>
    %291 = arith.mulf %289, %290 : vector<2x32xf32>
    %292 = arith.addf %288, %291 : vector<2x32xf32>
    %293 = vector.extract_strided_slice %285 {offsets = [0, 96], sizes = [2, 32], strides = [1, 1]} : vector<2x128xf32> to vector<2x32xf32>
    %294 = math.tanh %292 : vector<2x32xf32>
    %295 = arith.mulf %293, %294 : vector<2x32xf32>
    %c10_63 = arith.constant 10 : index
    %c0_64 = arith.constant 0 : index
    %296 = vector.load %arg10[%c10_63, %c0_64] : memref<16x32xf32, #tpu.memory_space<vmem>>, vector<2x32xf32>
    tpu.vector_store %arg10[%c10_63, %c0_64], %295 {strides = array<i32>} : memref<16x32xf32, #tpu.memory_space<vmem>>, vector<2x32xf32>,
    %297 = vector.extract_strided_slice %178 {offsets = [12, 0], sizes = [2, 128], strides = [1, 1]} : vector<16x128xf32> to vector<2x128xf32>
    %298 = arith.truncf %295 : vector<2x32xf32> to vector<2x32xbf16>
    %cst_65 = arith.constant dense<0.000000e+00> : vector<2x128xf32>
    %299 = tpu.matmul %298, %173, %cst_65 {dimension_numbers = #tpu.dot_dimension_numbers<[1], [0], [0], [1], [0, 0, 1, 1], [], []>} : vector<2x32xbf16>, vector<32x128xbf16>, vector<2x128xf32> -> vector<2x128xf32>
    %300 = arith.addf %297, %299 : vector<2x128xf32>
    %301 = arith.negf %300 : vector<2x128xf32>
    %302 = math.exp %301 : vector<2x128xf32>
    %cst_66 = arith.constant 1.000000e+00 : f32
    %303 = vector.broadcast %cst_66 : f32 to vector<2x128xf32>
    %304 = arith.addf %303, %302 : vector<2x128xf32>
    %305 = arith.divf %303, %304 : vector<2x128xf32>
    %306 = math.tanh %300 : vector<2x128xf32>
    %307 = vector.extract_strided_slice %305 {offsets = [0, 32], sizes = [2, 32], strides = [1, 1]} : vector<2x128xf32> to vector<2x32xf32>
    %308 = arith.mulf %307, %292 : vector<2x32xf32>
    %309 = vector.extract_strided_slice %305 {offsets = [0, 0], sizes = [2, 32], strides = [1, 1]} : vector<2x128xf32> to vector<2x32xf32>
    %310 = vector.extract_strided_slice %306 {offsets = [0, 64], sizes = [2, 32], strides = [1, 1]} : vector<2x128xf32> to vector<2x32xf32>
    %311 = arith.mulf %309, %310 : vector<2x32xf32>
    %312 = arith.addf %308, %311 : vector<2x32xf32>
    %313 = vector.extract_strided_slice %305 {offsets = [0, 96], sizes = [2, 32], strides = [1, 1]} : vector<2x128xf32> to vector<2x32xf32>
    %314 = math.tanh %312 : vector<2x32xf32>
    %315 = arith.mulf %313, %314 : vector<2x32xf32>
    %c12_67 = arith.constant 12 : index
    %c0_68 = arith.constant 0 : index
    %316 = vector.load %arg10[%c12_67, %c0_68] : memref<16x32xf32, #tpu.memory_space<vmem>>, vector<2x32xf32>
    tpu.vector_store %arg10[%c12_67, %c0_68], %315 {strides = array<i32>} : memref<16x32xf32, #tpu.memory_space<vmem>>, vector<2x32xf32>,
    %317 = vector.extract_strided_slice %178 {offsets = [14, 0], sizes = [2, 128], strides = [1, 1]} : vector<16x128xf32> to vector<2x128xf32>
    %318 = arith.truncf %315 : vector<2x32xf32> to vector<2x32xbf16>
    %cst_69 = arith.constant dense<0.000000e+00> : vector<2x128xf32>
    %319 = tpu.matmul %318, %173, %cst_69 {dimension_numbers = #tpu.dot_dimension_numbers<[1], [0], [0], [1], [0, 0, 1, 1], [], []>} : vector<2x32xbf16>, vector<32x128xbf16>, vector<2x128xf32> -> vector<2x128xf32>
    %320 = arith.addf %317, %319 : vector<2x128xf32>
    %321 = arith.negf %320 : vector<2x128xf32>
    %322 = math.exp %321 : vector<2x128xf32>
    %cst_70 = arith.constant 1.000000e+00 : f32
    %323 = vector.broadcast %cst_70 : f32 to vector<2x128xf32>
    %324 = arith.addf %323, %322 : vector<2x128xf32>
    %325 = arith.divf %323, %324 : vector<2x128xf32>
    %326 = math.tanh %320 : vector<2x128xf32>
    %327 = vector.extract_strided_slice %325 {offsets = [0, 32], sizes = [2, 32], strides = [1, 1]} : vector<2x128xf32> to vector<2x32xf32>
    %328 = arith.mulf %327, %312 : vector<2x32xf32>
    %329 = vector.extract_strided_slice %325 {offsets = [0, 0], sizes = [2, 32], strides = [1, 1]} : vector<2x128xf32> to vector<2x32xf32>
    %330 = vector.extract_strided_slice %326 {offsets = [0, 64], sizes = [2, 32], strides = [1, 1]} : vector<2x128xf32> to vector<2x32xf32>
    %331 = arith.mulf %329, %330 : vector<2x32xf32>
    %332 = arith.addf %328, %331 : vector<2x32xf32>
    %333 = vector.extract_strided_slice %325 {offsets = [0, 96], sizes = [2, 32], strides = [1, 1]} : vector<2x128xf32> to vector<2x32xf32>
    %334 = math.tanh %332 : vector<2x32xf32>
    %335 = arith.mulf %333, %334 : vector<2x32xf32>
    %c14_71 = arith.constant 14 : index
    %c0_72 = arith.constant 0 : index
    %336 = vector.load %arg10[%c14_71, %c0_72] : memref<16x32xf32, #tpu.memory_space<vmem>>, vector<2x32xf32>
    tpu.vector_store %arg10[%c14_71, %c0_72], %335 {strides = array<i32>} : memref<16x32xf32, #tpu.memory_space<vmem>>, vector<2x32xf32>,
    %c8_73 = arith.constant 8 : index
    %c0_74 = arith.constant 0 : index
    %337 = vector.load %arg10[%c8_73, %c0_74] : memref<16x32xf32, #tpu.memory_space<vmem>>, vector<8x32xf32>
    %338 = arith.truncf %337 : vector<8x32xf32> to vector<8x32xbf16>
    %cst_75 = arith.constant dense<0.000000e+00> : vector<8x4xf32>
    %339 = tpu.matmul %338, %0, %cst_75 {dimension_numbers = #tpu.dot_dimension_numbers<[1], [0], [0], [1], [0, 0, 1, 1], [], []>} : vector<8x32xbf16>, vector<32x4xbf16>, vector<8x4xf32> -> vector<8x4xf32>
    %340 = vector.broadcast %1 : vector<1x4xf32> to vector<8x4xf32>
    %341 = arith.addf %339, %340 : vector<8x4xf32>
    %c0_76 = arith.constant 0 : index
    %c0_77 = arith.constant 0 : index
    %342 = vector.load %arg9[%c0_76, %c0_77] : memref<8x4xf32, #tpu.memory_space<vmem>>, vector<8x4xf32>
    tpu.vector_store %arg9[%c0_76, %c0_77], %341 {strides = array<i32>} : memref<8x4xf32, #tpu.memory_space<vmem>>, vector<8x4xf32>,
    return
  }
}

</mosaic_0001>

<bundles_post_ra>
// kernel: lstm_forward.1
= control target key start
LH: loop header
LB: loop body
LE: loop exit
PB: predicated region body
PF: predicated region fallthrough
CT: control target
= control target key end

     0   :  { %14 = vsyncpa [#allocation4], 0  ;;  %s1509_s12 = smov [#allocation3]   ;;  %s1510_s14 = smov 64   ;;  %s1783_s0 = inlined_call_operand.vmem [shape: bf16[16,4], index: 0, kind: input, shape index: {}]   ;;  %s1784_s1 = inlined_call_operand.vmem [shape: bf16[4,128], index: 1, kind: input, shape index: {}]   ;;  %s1785_s2 = inlined_call_operand.vmem [shape: bf16[32,128], index: 2, kind: input, shape index: {}]   ;;  %s1786_s3 = inlined_call_operand.vmem [shape: f32[1,128], index: 3, kind: input, shape index: {}]   ;;  %s1787_s4 = inlined_call_operand.vmem [shape: bf16[32,128], index: 4, kind: input, shape index: {}]   ;;  %s1788_s5 = inlined_call_operand.hbm [shape: bf16[32,128], index: 5, kind: input, shape index: {}]   ;;  %s1789_s6 = inlined_call_operand.vmem [shape: f32[1,128], index: 6, kind: input, shape index: {}]   ;;  %s1790_s7 = inlined_call_operand.vmem [shape: bf16[32,4], index: 7, kind: input, shape index: {}]   ;;  %s1791_s8 = inlined_call_operand.vmem [shape: f32[1,4], index: 8, kind: input, shape index: {}]   ;;  %s1792_s9 = inlined_call_operand.vmem [shape: f32[8,4], index: 9, kind: output, shape index: {}]  }
   0x1   :  { %s29_s11 = sshll.u32 %s1788_s5, 4  ;;  %s31_s13 = sshll.u32 %s1509_s12, 4  ;;  %s30_s11 = int_to_ptr.hbm [resolvable:$true] %s29_s11  ;;  %s32_s13 = int_to_ptr.vmem [resolvable:$true] %s31_s13 }
   0x2   :  { %s1511_s15 = smov 4  }
   0x3   :  { %37 = dma.hbm_to_vmem [thread:$0]  %s30_s11, 256, %s32_s13, [#allocation4], %s1510_s14, %s1510_s14, %s1511_s15  }
   0x4   :  { %1507 = dma.done.wait [#allocation4], 256  }
   0x5   :  { %1508 = vsyncadd [#allocation4], 4294967040  ;;  %vm74_vm0 = vcmask 1041408   ;;  %v56_v0 = vld [vmem:[%s1784_s1] sm:$0x3]  ;;  %v1342_v1 = vld [vmem:[%s1785_s2 + $0x8] sm:$0xff] }
   0x6   :  { %v76_v2 = vsel %vm74_vm0, %v56_v0, 0  ;;  %v1340_v3 = vld [vmem:[%s1783_s0] sm:$0xff]  ;;  %114 = vmatpush.bf16.msra.mxu1 %v1342_v1  ;;  %vm70_vm1 = vcmask 31744   ;;  %178 = vmatpush.bf16.msra.mxu2 %v1342_v1  ;;  %v1512_v5 = vmov 0   ;;  %vm104_vm6 = vcmask 261120  }
   0x7   :  { %85 = vmatpush.bf16.msra.mxu0 %v76_v2  ;;  %v1341_v4 = vld [vmem:[%s1785_s2] sm:$0xff]  ;;  %249 = vmatpush.bf16.msra.mxu3 %v1342_v1  ;;  %s1513_s2 = smov 32  }
   0x8   :  { %v1586_v6 = vld [vmem:[%s1786_s3] ss:$0 sm:$0xff] }
   0xa   :  { %1273 = vmatmul.msk.bf16.vlgmr.msra.gmra.mxu0 %vm70_vm1, %v1340_v3  ;;  %115 = vmatpush.bf16.msra.mxu1 %v1341_v4 }
   0xb   :  { %320 = vmatpush.bf16.msrb.mxu0 %v1342_v1  ;;  %179 = vmatpush.bf16.msra.mxu2 %v1341_v4 }
   0xc   :  { %250 = vmatpush.bf16.msra.mxu3 %v1341_v4 }
   0xd   :  { %116 = vmatmul.bf16.vlgmr.msra.gmra.mxu1 %v1512_v5 }
   0xe   :  { %391 = vmatpush.bf16.msrb.mxu1 %v1342_v1 }
   0xf   :  { %321 = vmatpush.bf16.msrb.mxu0 %v1341_v4  ;;  %457 = vmatpush.bf16.msrb.mxu2 %v1342_v1 }
  0x10   :  { %527 = vmatpush.bf16.msrb.mxu3 %v1342_v1 }
  0x12   :  { %392 = vmatpush.bf16.msrb.mxu1 %v1341_v4 }
  0x13   :  { %597 = vmatpush.bf16.msra.mxu0 %v1342_v1  ;;  %458 = vmatpush.bf16.msrb.mxu2 %v1341_v4 }
  0x14   :  { %528 = vmatpush.bf16.msrb.mxu3 %v1341_v4 }
  0x17   :  { %598 = vmatpush.bf16.msra.mxu0 %v1341_v4 }
  0x87   :  { %v87_v7 = vpop.f32.mrf.mxu0 }
  0x88   :  { %v1589_v8 = vadd.f32 %v1586_v6, %v87_v7 }
  0x8a   :  { %v117_v9 = vpop.f32.mrf.mxu1 }
  0x8b   :  { %v121_v10 = vadd.f32 %v117_v9, %v1589_v8 }
  0x8d   :  { %1355 = vtanh.f32 %v121_v10  ;;  %v1282_v13 = vmul.f32 -1.442695, %v121_v10 }
  0x8f   :  { %1357 = vpow2.f32 %v1282_v13 }
  0x92   :  { %v119_v11 = vpop.f32.mrf.mxu1 }
  0x93   :  { %v1356_v12 = vpop.eup %1355 }
  0x94   :  { %144 = vrot.lane.b32.xlu0 %v1356_v12, %s1510_s14 }
  0x95   :  { %v1358_v14 = vpop.eup %1357 }
  0x96   :  { %v125_v15 = vadd.f32 1.0, %v1358_v14 }
  0x98   :  { %1359 = vrcp.f32 %v125_v15  ;;  %v137_v21 = vand.u32 2147483648, %v125_v15  ;;  %vm131_vm3 = vweird.f32 %v125_v15  ;;  %v135_v22 = vand.u32 2147483647, %v125_v15 }
  0x9a   :  { %v138_v24 = vor.u32 1.1754944e-38, %v137_v21  ;;  %vm136_vm5 = vcmp.eq.f32.partialorder %v135_v22, 8.507059e+37 }
  0x9e   :  { %v1360_v16 = vpop.eup %1359 }
  0x9f   :  { %v127_v17 = vmul.f32 %v1360_v16, %v125_v15  ;;  %vm132_vm2 = vweird.f32 %v1360_v16 }
  0xa0   :  { %vm133_vm4 = vmor %vm131_vm3, %vm132_vm2 }
  0xa1   :  { %v128_v18 = vsub.f32 1.0, %v127_v17 }
  0xa3   :  { %v129_v19 = vmul.f32 %v1360_v16, %v128_v18 }
  0xa5   :  { %v130_v20 = vadd.f32 %v1360_v16, %v129_v19 }
  0xa7   :  { %v134_v23 = vsel %vm133_vm4, %v1360_v16, %v130_v20 }
  0xa8   :  { %v139_v26 = vsel %vm136_vm5, %v138_v24, %v134_v23 }
  0xa9   :  { %v142_v28 = vmul.f32 0.0, %v139_v26 }
 0x106   :  { %v145_v25 = vpop.permute.xlu0 %144 }
 0x107   :  { %v147_v27 = vmul.f32 %v145_v25, %v139_v26 }
 0x109   :  { %149 = vrot.lane.b32.xlu0 %v147_v27, %s1513_s2 }
 0x17b   :  { %v150_v29 = vpop.permute.xlu0 %149 }
 0x17c   :  { %v152_v30 = vadd.f32 %v150_v29, %v142_v28 }
 0x17e   :  { %1361 = vtanh.f32 %v152_v30  ;;  %v210_v56 = vrot.slane %v152_v30, 6 }
 0x184   :  { %v1362_v31 = vpop.eup %1361 }
 0x185   :  { %155 = vrot.lane.b32.xlu1 %v1362_v31, %s1510_s14 }
 0x1f7   :  { %v156_v32 = vpop.permute.xlu1 %155 }
 0x1f8   :  { %v1595_v33 = vmul.f32 %v156_v32, %v139_v26 }
 0x1fa   :  { %v165_v34 = vpack.c.bf16 %v1595_v33, %v1595_v33 }
 0x1fc   :  { %167 = vrot.lane.b32.xlu1 %v165_v34, %s1513_s2 }
 0x26e   :  { %v168_v35 = vpop.permute.xlu1 %167 }
 0x26f   :  { %1283 = vmatmul.msk.bf16.vlgmr.msra.gmra.mxu2 %vm104_vm6, %v168_v35 }
 0x2f2   :  { %v181_v36 = vpop.f32.mrf.mxu2 }
 0x2f3   :  { %v186_v37 = vrot.slane %v181_v36, 6  ;;  %v89_v36 = vpop.f32.mrf.mxu0 }
 0x2f5   :  { %v188_v38 = vadd.f32 %v186_v37, %v1589_v8 }
 0x2f7   :  { %1363 = vtanh.f32 %v188_v38  ;;  %v1284_v41 = vmul.f32 -1.442695, %v188_v38 }
 0x2f9   :  { %1365 = vpow2.f32 %v1284_v41 }
 0x2fa   :  { %v183_v39 = vpop.f32.mrf.mxu2 }
 0x2fd   :  { %v1364_v40 = vpop.eup %1363 }
 0x2fe   :  { %214 = vrot.lane.b32.xlu2 %v1364_v40, %s1510_s14 }
 0x2ff   :  { %v1366_v42 = vpop.eup %1365 }
 0x300   :  { %v192_v43 = vadd.f32 1.0, %v1366_v42 }
 0x302   :  { %1367 = vrcp.f32 %v192_v43  ;;  %v204_v49 = vand.u32 2147483648, %v192_v43  ;;  %vm198_vm8 = vweird.f32 %v192_v43  ;;  %v202_v50 = vand.u32 2147483647, %v192_v43 }
 0x304   :  { %v205_v52 = vor.u32 1.1754944e-38, %v204_v49  ;;  %vm203_vm10 = vcmp.eq.f32.partialorder %v202_v50, 8.507059e+37 }
 0x308   :  { %v1368_v44 = vpop.eup %1367 }
 0x309   :  { %v194_v45 = vmul.f32 %v1368_v44, %v192_v43  ;;  %vm199_vm7 = vweird.f32 %v1368_v44 }
 0x30a   :  { %vm200_vm9 = vmor %vm198_vm8, %vm199_vm7 }
 0x30b   :  { %v195_v46 = vsub.f32 1.0, %v194_v45 }
 0x30d   :  { %v196_v47 = vmul.f32 %v1368_v44, %v195_v46 }
 0x30f   :  { %v197_v48 = vadd.f32 %v1368_v44, %v196_v47 }
 0x311   :  { %v201_v51 = vsel %vm200_vm9, %v1368_v44, %v197_v48 }
 0x312   :  { %v206_v54 = vsel %vm203_vm10, %v205_v52, %v201_v51 }
 0x313   :  { %v212_v57 = vmul.f32 %v210_v56, %v206_v54 }
 0x358   :  { %v215_v53 = vpop.permute.xlu2 %214 }
 0x359   :  { %v217_v55 = vmul.f32 %v215_v53, %v206_v54 }
 0x35b   :  { %219 = vrot.lane.b32.xlu2 %v217_v55, %s1513_s2 }
 0x3b5   :  { %v220_v58 = vpop.permute.xlu2 %219 }
 0x3b6   :  { %v222_v59 = vadd.f32 %v220_v58, %v212_v57 }
 0x3b8   :  { %1369 = vtanh.f32 %v222_v59  ;;  %v281_v25 = vrot.slane %v222_v59, 6 }
 0x3be   :  { %v1370_v60 = vpop.eup %1369 }
 0x3bf   :  { %225 = vrot.lane.b32.xlu0 %v1370_v60, %s1510_s14 }
 0x431   :  { %v226_v61 = vpop.permute.xlu0 %225 }
 0x432   :  { %v1605_v62 = vmul.f32 %v226_v61, %v206_v54 }
 0x434   :  { %v235_v63 = vpack.c.bf16 %v1605_v62, %v1605_v62 }
 0x436   :  { %v237_v0 = vrot.slane %v235_v63, 1 }
 0x438   :  { %238 = vrot.lane.b32.xlu1 %v237_v0, %s1513_s2 }
 0x4aa   :  { %v239_v1 = vpop.permute.xlu1 %238 }
 0x4ab   :  { %1285 = vmatmul.msk.bf16.vlgmr.msra.gmra.mxu3 %vm104_vm6, %v239_v1 }
 0x52e   :  { %v252_v2 = vpop.f32.mrf.mxu3 }
 0x52f   :  { %v257_v3 = vrot.slane %v252_v2, 4 }
 0x531   :  { %v259_v4 = vadd.f32 %v257_v3, %v1589_v8  ;;  %v1632_v3 = vadd.f32 %v1586_v6, %v89_v36 }
 0x533   :  { %1371 = vtanh.f32 %v259_v4  ;;  %v1286_v10 = vmul.f32 -1.442695, %v259_v4 }
 0x535   :  { %1373 = vpow2.f32 %v1286_v10 }
 0x536   :  { %v254_v7 = vpop.f32.mrf.mxu3 }
 0x539   :  { %v1372_v9 = vpop.eup %1371 }
 0x53a   :  { %285 = vrot.lane.b32.xlu2 %v1372_v9, %s1510_s14 }
 0x53b   :  { %v1374_v11 = vpop.eup %1373 }
 0x53c   :  { %v263_v12 = vadd.f32 1.0, %v1374_v11 }
 0x53e   :  { %1375 = vrcp.f32 %v263_v12  ;;  %v275_v18 = vand.u32 2147483648, %v263_v12  ;;  %vm269_vm12 = vweird.f32 %v263_v12  ;;  %v273_v19 = vand.u32 2147483647, %v263_v12 }
 0x540   :  { %v276_v21 = vor.u32 1.1754944e-38, %v275_v18  ;;  %vm274_vm14 = vcmp.eq.f32.partialorder %v273_v19, 8.507059e+37 }
 0x544   :  { %v1376_v13 = vpop.eup %1375 }
 0x545   :  { %v265_v14 = vmul.f32 %v1376_v13, %v263_v12  ;;  %vm270_vm11 = vweird.f32 %v1376_v13 }
 0x546   :  { %vm271_vm13 = vmor %vm269_vm12, %vm270_vm11 }
 0x547   :  { %v266_v15 = vsub.f32 1.0, %v265_v14 }
 0x549   :  { %v267_v16 = vmul.f32 %v1376_v13, %v266_v15 }
 0x54b   :  { %v268_v17 = vadd.f32 %v1376_v13, %v267_v16 }
 0x54d   :  { %v272_v20 = vsel %vm271_vm13, %v1376_v13, %v268_v17 }
 0x54e   :  { %v277_v23 = vsel %vm274_vm14, %v276_v21, %v272_v20 }
 0x54f   :  { %v283_v26 = vmul.f32 %v281_v25, %v277_v23 }
 0x594   :  { %v286_v22 = vpop.permute.xlu2 %285 }
 0x595   :  { %v288_v24 = vmul.f32 %v286_v22, %v277_v23 }
 0x597   :  { %290 = vrot.lane.b32.xlu0 %v288_v24, %s1513_s2 }
 0x609   :  { %v291_v27 = vpop.permute.xlu0 %290 }
 0x60a   :  { %v293_v28 = vadd.f32 %v291_v27, %v283_v26 }
 0x60c   :  { %1377 = vtanh.f32 %v293_v28  ;;  %v352_v56 = vrot.slane %v293_v28, 6 }
 0x612   :  { %v1378_v29 = vpop.eup %1377 }
 0x613   :  { %296 = vrot.lane.b32.xlu1 %v1378_v29, %s1510_s14 }
 0x685   :  { %v297_v30 = vpop.permute.xlu1 %296 }
 0x686   :  { %v1615_v31 = vmul.f32 %v297_v30, %v277_v23 }
 0x688   :  { %v306_v32 = vpack.c.bf16 %v1615_v31, %v1615_v31 }
 0x68a   :  { %v308_v34 = vrot.slane %v306_v32, 2 }
 0x68c   :  { %309 = vrot.lane.b32.xlu2 %v308_v34, %s1513_s2 }
 0x6e6   :  { %v310_v35 = vpop.permute.xlu2 %309 }
 0x6e7   :  { %1287 = vmatmul.msk.bf16.vlgmr.msrb.gmra.mxu0 %vm104_vm6, %v310_v35 }
 0x764   :  { %v323_v37 = vpop.f32.mrf.mxu0 }
 0x765   :  { %v328_v38 = vrot.slane %v323_v37, 2 }
 0x767   :  { %v330_v39 = vadd.f32 %v328_v38, %v1589_v8 }
 0x769   :  { %1379 = vtanh.f32 %v330_v39  ;;  %v1288_v42 = vmul.f32 -1.442695, %v330_v39 }
 0x76b   :  { %1381 = vpow2.f32 %v1288_v42 }
 0x76c   :  { %v325_v40 = vpop.f32.mrf.mxu0 }
 0x76f   :  { %v1380_v41 = vpop.eup %1379 }
 0x770   :  { %356 = vrot.lane.b32.xlu0 %v1380_v41, %s1510_s14 }
 0x771   :  { %v1382_v43 = vpop.eup %1381 }
 0x772   :  { %v334_v44 = vadd.f32 1.0, %v1382_v43 }
 0x774   :  { %1383 = vrcp.f32 %v334_v44  ;;  %v346_v50 = vand.u32 2147483648, %v334_v44  ;;  %vm340_vm0 = vweird.f32 %v334_v44  ;;  %v344_v51 = vand.u32 2147483647, %v334_v44 }
 0x776   :  { %v347_v52 = vor.u32 1.1754944e-38, %v346_v50  ;;  %vm345_vm3 = vcmp.eq.f32.partialorder %v344_v51, 8.507059e+37 }
 0x77a   :  { %v1384_v45 = vpop.eup %1383 }
 0x77b   :  { %v336_v46 = vmul.f32 %v1384_v45, %v334_v44  ;;  %vm341_vm15 = vweird.f32 %v1384_v45 }
 0x77c   :  { %vm342_vm2 = vmor %vm340_vm0, %vm341_vm15 }
 0x77d   :  { %v337_v47 = vsub.f32 1.0, %v336_v46 }
 0x77f   :  { %v338_v48 = vmul.f32 %v1384_v45, %v337_v47 }
 0x781   :  { %v339_v49 = vadd.f32 %v1384_v45, %v338_v48 }
 0x783   :  { %v343_v8 = vsel %vm342_vm2, %v1384_v45, %v339_v49 }
 0x784   :  { %v348_v54 = vsel %vm345_vm3, %v347_v52, %v343_v8 }
 0x785   :  { %v354_v57 = vmul.f32 %v352_v56, %v348_v54 }
 0x7e2   :  { %v357_v53 = vpop.permute.xlu0 %356 }
 0x7e3   :  { %v359_v55 = vmul.f32 %v357_v53, %v348_v54 }
 0x7e5   :  { %361 = vrot.lane.b32.xlu1 %v359_v55, %s1513_s2 }
 0x857   :  { %v362_v58 = vpop.permute.xlu1 %361 }
 0x858   :  { %v364_v59 = vadd.f32 %v362_v58, %v354_v57 }
 0x85a   :  { %1385 = vtanh.f32 %v364_v59  ;;  %v420_v25 = vrot.slane %v364_v59, 6 }
 0x860   :  { %v1386_v60 = vpop.eup %1385 }
 0x861   :  { %367 = vrot.lane.b32.xlu2 %v1386_v60, %s1510_s14 }
 0x8bb   :  { %v368_v61 = vpop.permute.xlu2 %367 }
 0x8bc   :  { %v1625_v63 = vmul.f32 %v368_v61, %v348_v54 }
 0x8be   :  { %v377_v0 = vpack.c.bf16 %v1625_v63, %v1625_v63 }
 0x8c0   :  { %v379_v1 = vrot.slane %v377_v0, 3 }
 0x8c2   :  { %380 = vrot.lane.b32.xlu0 %v379_v1, %s1513_s2 }
 0x934   :  { %v381_v2 = vpop.permute.xlu0 %380 }
 0x935   :  { %1289 = vmatmul.msk.bf16.vlgmr.msrb.gmra.mxu1 %vm104_vm6, %v381_v2 }
 0x9b2   :  { %v394_v4 = vpop.f32.mrf.mxu1 }
 0x9b3   :  { %v398_v7 = vadd.f32 %v394_v4, %v1632_v3 }
 0x9b5   :  { %1387 = vtanh.f32 %v398_v7  ;;  %v1290_v11 = vmul.f32 -1.442695, %v398_v7 }
 0x9b7   :  { %1389 = vpow2.f32 %v1290_v11 }
 0x9ba   :  { %v396_v9 = vpop.f32.mrf.mxu1 }
 0x9bb   :  { %v1388_v10 = vpop.eup %1387 }
 0x9bc   :  { %424 = vrot.lane.b32.xlu1 %v1388_v10, %s1510_s14 }
 0x9bd   :  { %v1390_v12 = vpop.eup %1389 }
 0x9be   :  { %v402_v13 = vadd.f32 1.0, %v1390_v12 }
 0x9c0   :  { %1391 = vrcp.f32 %v402_v13  ;;  %v414_v6 = vand.u32 2147483648, %v402_v13  ;;  %vm408_vm5 = vweird.f32 %v402_v13  ;;  %v412_v19 = vand.u32 2147483647, %v402_v13 }
 0x9c2   :  { %v415_v21 = vor.u32 1.1754944e-38, %v414_v6  ;;  %vm413_vm8 = vcmp.eq.f32.partialorder %v412_v19, 8.507059e+37 }
 0x9c6   :  { %v1392_v14 = vpop.eup %1391 }
 0x9c7   :  { %v404_v15 = vmul.f32 %v1392_v14, %v402_v13  ;;  %vm409_vm4 = vweird.f32 %v1392_v14 }
 0x9c8   :  { %vm410_vm7 = vmor %vm408_vm5, %vm409_vm4 }
 0x9c9   :  { %v405_v16 = vsub.f32 1.0, %v404_v15 }
 0x9cb   :  { %v406_v17 = vmul.f32 %v1392_v14, %v405_v16 }
 0x9cd   :  { %v407_v18 = vadd.f32 %v1392_v14, %v406_v17 }
 0x9cf   :  { %v411_v20 = vsel %vm410_vm7, %v1392_v14, %v407_v18  ;;  %vm163_vm7 = vcmask 254976  }
 0x9d0   :  { %v416_v23 = vsel %vm413_vm8, %v415_v21, %v411_v20  ;;  %vm375_vm8 = vcmask 261126  }
 0x9d1   :  { %v422_v26 = vmul.f32 %v420_v25, %v416_v23 }
 0xa2e   :  { %v425_v22 = vpop.permute.xlu1 %424 }
 0xa2f   :  { %v427_v24 = vmul.f32 %v425_v22, %v416_v23 }
 0xa31   :  { %429 = vrot.lane.b32.xlu2 %v427_v24, %s1513_s2 }
 0xa8b   :  { %v430_v27 = vpop.permute.xlu2 %429 }
 0xa8c   :  { %v432_v28 = vadd.f32 %v430_v27, %v422_v26 }
 0xa8e   :  { %1393 = vtanh.f32 %v432_v28  ;;  %v489_v55 = vrot.slane %v432_v28, 6 }
 0xa94   :  { %v1394_v29 = vpop.eup %1393 }
 0xa95   :  { %435 = vrot.lane.b32.xlu0 %v1394_v29, %s1510_s14 }
 0xb07   :  { %v436_v30 = vpop.permute.xlu0 %435 }
 0xb08   :  { %v1638_v32 = vmul.f32 %v436_v30, %v416_v23 }
 0xb0a   :  { %v444_v34 = vpack.c.bf16 %v1638_v32, %v1638_v32 }
 0xb0c   :  { %446 = vrot.lane.b32.xlu1 %v444_v34, %s1513_s2 }
 0xb7e   :  { %v447_v35 = vpop.permute.xlu1 %446 }
 0xb7f   :  { %1291 = vmatmul.msk.bf16.vlgmr.msrb.gmra.mxu2 %vm104_vm6, %v447_v35 }
 0xc02   :  { %v460_v36 = vpop.f32.mrf.mxu2 }
 0xc03   :  { %v465_v37 = vrot.slane %v460_v36, 6 }
 0xc05   :  { %v467_v38 = vadd.f32 %v465_v37, %v1632_v3 }
 0xc07   :  { %1395 = vtanh.f32 %v467_v38  ;;  %v1292_v41 = vmul.f32 -1.442695, %v467_v38 }
 0xc09   :  { %1397 = vpow2.f32 %v1292_v41 }
 0xc0a   :  { %v462_v39 = vpop.f32.mrf.mxu2 }
 0xc0d   :  { %v1396_v40 = vpop.eup %1395 }
 0xc0e   :  { %493 = vrot.lane.b32.xlu2 %v1396_v40, %s1510_s14 }
 0xc0f   :  { %v1398_v42 = vpop.eup %1397 }
 0xc10   :  { %v471_v43 = vadd.f32 1.0, %v1398_v42 }
 0xc12   :  { %1399 = vrcp.f32 %v471_v43  ;;  %v483_v49 = vand.u32 2147483648, %v471_v43  ;;  %vm477_vm10 = vweird.f32 %v471_v43  ;;  %v481_v50 = vand.u32 2147483647, %v471_v43 }
 0xc14   :  { %v484_v8 = vor.u32 1.1754944e-38, %v483_v49  ;;  %vm482_vm12 = vcmp.eq.f32.partialorder %v481_v50, 8.507059e+37 }
 0xc18   :  { %v1400_v44 = vpop.eup %1399 }
 0xc19   :  { %v473_v45 = vmul.f32 %v1400_v44, %v471_v43  ;;  %vm478_vm9 = vweird.f32 %v1400_v44 }
 0xc1a   :  { %vm479_vm11 = vmor %vm477_vm10, %vm478_vm9  ;;  %vm304_vm9 = vcmask 259076   ;;  %vm233_vm10 = vcmask 257026  }
 0xc1b   :  { %v474_v46 = vsub.f32 1.0, %v473_v45 }
 0xc1d   :  { %v475_v47 = vmul.f32 %v1400_v44, %v474_v46 }
 0xc1f   :  { %v476_v48 = vadd.f32 %v1400_v44, %v475_v47 }
 0xc21   :  { %v480_v51 = vsel %vm479_vm11, %v1400_v44, %v476_v48 }
 0xc22   :  { %v485_v53 = vsel %vm482_vm12, %v484_v8, %v480_v51 }
 0xc23   :  { %v491_v56 = vmul.f32 %v489_v55, %v485_v53 }
 0xc68   :  { %v494_v52 = vpop.permute.xlu2 %493 }
 0xc69   :  { %v496_v54 = vmul.f32 %v494_v52, %v485_v53 }
 0xc6b   :  { %498 = vrot.lane.b32.xlu0 %v496_v54, %s1513_s2 }
 0xcdd   :  { %v499_v57 = vpop.permute.xlu0 %498 }
 0xcde   :  { %v501_v58 = vadd.f32 %v499_v57, %v491_v56 }
 0xce0   :  { %1401 = vtanh.f32 %v501_v58  ;;  %v559_v26 = vrot.slane %v501_v58, 6 }
 0xce6   :  { %v1402_v59 = vpop.eup %1401 }
 0xce7   :  { %504 = vrot.lane.b32.xlu1 %v1402_v59, %s1510_s14 }
 0xd59   :  { %v505_v60 = vpop.permute.xlu1 %504 }
 0xd5a   :  { %v1648_v61 = vmul.f32 %v505_v60, %v485_v53 }
 0xd5c   :  { %v513_v0 = vpack.c.bf16 %v1648_v61, %v1648_v61 }
 0xd5e   :  { %v515_v1 = vrot.slane %v513_v0, 1 }
 0xd60   :  { %516 = vrot.lane.b32.xlu2 %v515_v1, %s1513_s2 }
 0xdba   :  { %v517_v2 = vpop.permute.xlu2 %516 }
 0xdbb   :  { %1293 = vmatmul.msk.bf16.vlgmr.msrb.gmra.mxu3 %vm104_vm6, %v517_v2 }
 0xe3e   :  { %v530_v4 = vpop.f32.mrf.mxu3 }
 0xe3f   :  { %v535_v7 = vrot.slane %v530_v4, 4  ;;  %v1344_v4 = vld [vmem:[%s1787_s4 + $0x8] sm:$0xff] }
 0xe40   :  { %689 = vmatpush.bf16.msra.mxu1 %v1344_v4 }
 0xe41   :  { %v537_v9 = vadd.f32 %v535_v7, %v1632_v3  ;;  %v1345_v7 = vld [vmem:[#allocation3] sm:$0xff] }
 0xe43   :  { %1403 = vtanh.f32 %v537_v9  ;;  %v1294_v12 = vmul.f32 -1.442695, %v537_v9 }
 0xe45   :  { %1405 = vpow2.f32 %v1294_v12 }
 0xe46   :  { %v532_v10 = vpop.f32.mrf.mxu3 }
 0xe49   :  { %v1404_v11 = vpop.eup %1403 }
 0xe4a   :  { %563 = vrot.lane.b32.xlu0 %v1404_v11, %s1510_s14  ;;  %v1343_v11 = vld [vmem:[%s1787_s4] sm:$0xff] }
 0xe4b   :  { %v1406_v13 = vpop.eup %1405  ;;  %690 = vmatpush.bf16.msra.mxu1 %v1343_v11 }
 0xe4c   :  { %v541_v14 = vadd.f32 1.0, %v1406_v13 }
 0xe4e   :  { %1407 = vrcp.f32 %v541_v14  ;;  %v553_v19 = vand.u32 2147483648, %v541_v14  ;;  %vm547_vm14 = vweird.f32 %v541_v14  ;;  %v551_v20 = vand.u32 2147483647, %v541_v14 }
 0xe50   :  { %v554_v22 = vor.u32 1.1754944e-38, %v553_v19  ;;  %vm552_vm0 = vcmp.eq.f32.partialorder %v551_v20, 8.507059e+37 }
 0xe54   :  { %v1408_v15 = vpop.eup %1407 }
 0xe55   :  { %v543_v16 = vmul.f32 %v1408_v15, %v541_v14  ;;  %vm548_vm13 = vweird.f32 %v1408_v15 }
 0xe56   :  { %vm549_vm15 = vmor %vm547_vm14, %vm548_vm13 }
 0xe57   :  { %v544_v17 = vsub.f32 1.0, %v543_v16 }
 0xe59   :  { %v545_v18 = vmul.f32 %v1408_v15, %v544_v17  ;;  %v1697_v17 = vld [vmem:[%s1789_s6] ss:$0 sm:$0xff] }
 0xe5b   :  { %v546_v6 = vadd.f32 %v1408_v15, %v545_v18 }
 0xe5d   :  { %v550_v21 = vsel %vm549_vm15, %v1408_v15, %v546_v6 }
 0xe5e   :  { %v555_v24 = vsel %vm552_vm0, %v554_v22, %v550_v21 }
 0xe5f   :  { %v561_v27 = vmul.f32 %v559_v26, %v555_v24 }
 0xebc   :  { %v564_v23 = vpop.permute.xlu0 %563 }
 0xebd   :  { %v566_v25 = vmul.f32 %v564_v23, %v555_v24 }
 0xebf   :  { %568 = vrot.lane.b32.xlu1 %v566_v25, %s1513_s2 }
 0xf31   :  { %v569_v28 = vpop.permute.xlu1 %568 }
 0xf32   :  { %v571_v29 = vadd.f32 %v569_v28, %v561_v27 }
 0xf34   :  { %1409 = vtanh.f32 %v571_v29  ;;  %v629_v58 = vrot.slane %v571_v29, 6 }
 0xf3a   :  { %v1410_v30 = vpop.eup %1409 }
 0xf3b   :  { %574 = vrot.lane.b32.xlu2 %v1410_v30, %s1510_s14 }
 0xf95   :  { %v575_v34 = vpop.permute.xlu2 %574 }
 0xf96   :  { %v577_v35 = vmul.f32 %v575_v34, %v555_v24 }
 0xf98   :  { %v583_v36 = vpack.c.bf16 %v577_v35, %v577_v35 }
 0xf9a   :  { %v585_v37 = vrot.slane %v583_v36, 2 }
 0xf9c   :  { %586 = vrot.lane.b32.xlu0 %v585_v37, %s1513_s2 }
0x100e   :  { %v587_v38 = vpop.permute.xlu0 %586 }
0x100f   :  { %1295 = vmatmul.msk.bf16.vlgmr.msra.gmra.mxu0 %vm104_vm6, %v587_v38 }
0x108c   :  { %v600_v39 = vpop.f32.mrf.mxu0 }
0x108d   :  { %v605_v40 = vrot.slane %v600_v39, 2 }
0x108f   :  { %v607_v41 = vadd.f32 %v605_v40, %v1632_v3 }
0x1091   :  { %1411 = vtanh.f32 %v607_v41  ;;  %v1296_v44 = vmul.f32 -1.442695, %v607_v41 }
0x1093   :  { %1413 = vpow2.f32 %v1296_v44 }
0x1094   :  { %v602_v42 = vpop.f32.mrf.mxu0 }
0x1097   :  { %v1412_v43 = vpop.eup %1411 }
0x1098   :  { %633 = vrot.lane.b32.xlu1 %v1412_v43, %s1510_s14 }
0x1099   :  { %v1414_v45 = vpop.eup %1413 }
0x109a   :  { %v611_v46 = vadd.f32 1.0, %v1414_v45 }
0x109c   :  { %1415 = vrcp.f32 %v611_v46  ;;  %v623_v51 = vand.u32 2147483648, %v611_v46  ;;  %vm617_vm3 = vweird.f32 %v611_v46  ;;  %v621_v8 = vand.u32 2147483647, %v611_v46 }
0x109e   :  { %v624_v52 = vor.u32 1.1754944e-38, %v623_v51  ;;  %vm622_vm5 = vcmp.eq.f32.partialorder %v621_v8, 8.507059e+37 }
0x10a0   :  { %160 = vrot.lane.b32.xlu1 %v1595_v33, %s1513_s2 }
0x10a2   :  { %v1416_v47 = vpop.eup %1415 }
0x10a3   :  { %v613_v3 = vmul.f32 %v1416_v47, %v611_v46  ;;  %vm618_vm2 = vweird.f32 %v1416_v47 }
0x10a4   :  { %vm619_vm4 = vmor %vm617_vm3, %vm618_vm2 }
0x10a5   :  { %v614_v48 = vsub.f32 1.0, %v613_v3 }
0x10a7   :  { %v615_v49 = vmul.f32 %v1416_v47, %v614_v48 }
0x10a8   :  { %372 = vrot.lane.b32.xlu1 %v1625_v63, %s1513_s2 }
0x10a9   :  { %v616_v50 = vadd.f32 %v1416_v47, %v615_v49 }
0x10ab   :  { %v620_v33 = vsel %vm619_vm4, %v1416_v47, %v616_v50 }
0x10ac   :  { %v625_v53 = vsel %vm622_vm5, %v624_v52, %v620_v33 }
0x10ad   :  { %v631_v59 = vmul.f32 %v629_v58, %v625_v53 }
0x10b0   :  { %579 = vrot.lane.b32.xlu1 %v577_v35, %s1513_s2 }
0x110a   :  { %v634_v63 = vpop.permute.xlu1 %633 }
0x110b   :  { %v636_v54 = vmul.f32 %v634_v63, %v625_v53 }
0x110d   :  { %638 = vrot.lane.b32.xlu2 %v636_v54, %s1513_s2 }
0x1112   :  { %v161_v55 = vpop.permute.xlu1 %160 }
0x1113   :  { %164 = vst.msk [vmem:[#allocation2] sm:$0x3] %vm163_vm7, %v161_v55 }
0x1115   :  { %230 = vrot.lane.b32.xlu2 %v1605_v62, %s1513_s2 }
0x111a   :  { %v373_v56 = vpop.permute.xlu1 %372 }
0x111b   :  { %376 = vst.msk [vmem:[#allocation2] sm:$0xc0] %vm375_vm8, %v373_v56 }
0x111d   :  { %440 = vrot.lane.b32.xlu2 %v1638_v32, %s1513_s2  ;;  %v1346_v32 = vld [vmem:[#allocation3 + $0x8] sm:$0xff] }
0x111e   :  { %715 = vmatpush.bf16.msra.mxu2 %v1346_v32  ;;  %773 = vmatpush.bf16.msra.mxu3 %v1346_v32 }
0x111f   :  { %838 = vmatpush.bf16.msrb.mxu0 %v1346_v32  ;;  %903 = vmatpush.bf16.msrb.mxu1 %v1346_v32 }
0x1122   :  { %v580_v57 = vpop.permute.xlu1 %579  ;;  %716 = vmatpush.bf16.msra.mxu2 %v1345_v7  ;;  %774 = vmatpush.bf16.msra.mxu3 %v1345_v7 }
0x1123   :  { %582 = vst.msk [vmem:[#allocation2 + $0x8] sm:$0x30] %vm304_vm9, %v580_v57  ;;  %839 = vmatpush.bf16.msrb.mxu0 %v1345_v7  ;;  %904 = vmatpush.bf16.msrb.mxu1 %v1345_v7 }
0x1125   :  { %717 = vmatmul.bf16.vlgmr.msra.gmra.mxu2 %v1512_v5 }
0x1126   :  { %968 = vmatpush.bf16.msrb.mxu2 %v1346_v32  ;;  %1034 = vmatpush.bf16.msrb.mxu3 %v1346_v32 }
0x1127   :  { %1104 = vmatpush.bf16.msra.mxu0 %v1346_v32 }
0x112a   :  { %969 = vmatpush.bf16.msrb.mxu2 %v1345_v7  ;;  %1035 = vmatpush.bf16.msrb.mxu3 %v1345_v7 }
0x112b   :  { %1105 = vmatpush.bf16.msra.mxu0 %v1345_v7 }
0x1167   :  { %v639_v60 = vpop.permute.xlu2 %638 }
0x1168   :  { %v641_v0 = vadd.f32 %v639_v60, %v631_v59 }
0x116a   :  { %1417 = vtanh.f32 %v641_v0 }
0x116f   :  { %v231_v1 = vpop.permute.xlu2 %230 }
0x1170   :  { %v1418_v2 = vpop.eup %1417  ;;  %234 = vst.msk [vmem:[#allocation2] sm:$0xc] %vm233_vm10, %v231_v1 }
0x1171   :  { %644 = vrot.lane.b32.xlu0 %v1418_v2, %s1510_s14 }
0x1177   :  { %v441_v62 = vpop.permute.xlu2 %440 }
0x1178   :  { %443 = vst.msk [vmem:[#allocation2 + $0x8] sm:$0x3] %vm163_vm7, %v441_v62 }
0x1179   :  { %301 = vrot.lane.b32.xlu0 %v1615_v31, %s1513_s2 }
0x1181   :  { %509 = vrot.lane.b32.xlu0 %v1648_v61, %s1513_s2 }
0x11a8   :  { %v718_v15 = vpop.f32.mrf.mxu2 }
0x11b0   :  { %v720_v16 = vpop.f32.mrf.mxu2 }
0x11e3   :  { %v645_v31 = vpop.permute.xlu0 %644 }
0x11e4   :  { %v647_v61 = vmul.f32 %v645_v31, %v625_v53 }
0x11e6   :  { %649 = vrot.lane.b32.xlu2 %v647_v61, %s1513_s2 }
0x11eb   :  { %v302_v9 = vpop.permute.xlu0 %301 }
0x11ec   :  { %305 = vst.msk [vmem:[#allocation2] sm:$0x30] %vm304_vm9, %v302_v9 }
0x11f3   :  { %v510_v10 = vpop.permute.xlu0 %509  ;;  %v653_v12 = vld [vmem:[#allocation2] sm:$0xff] }
0x11f4   :  { %512 = vst.msk [vmem:[#allocation2 + $0x8] sm:$0xc] %vm233_vm10, %v510_v10 }
0x1240   :  { %v650_v5 = vpop.permute.xlu2 %649 }
0x1241   :  { %652 = vst.msk [vmem:[#allocation2 + $0x8] sm:$0xc0] %vm375_vm8, %v650_v5 }
0x1248   :  { %v654_v13 = vld [vmem:[#allocation2 + $0x8] sm:$0xff] }
0x1249   :  { %v664_v14 = vpack.c.bf16 %v654_v13, %v653_v12 }
0x124b   :  { %1305 = vmatmul.msk.bf16.vlgmr.msra.gmra.mxu1 %vm104_vm6, %v664_v14 }
0x124c   :  { %1174 = vmatpush.bf16.msra.mxu1 %v1346_v32 }
0x1250   :  { %1175 = vmatpush.bf16.msra.mxu1 %v1345_v7 }
0x12c8   :  { %v692_v18 = vpop.f32.mrf.mxu1 }
0x12c9   :  { %v1700_v6 = vadd.f32 %v1697_v17, %v692_v18 }
0x12cb   :  { %v722_v19 = vadd.f32 %v718_v15, %v1700_v6 }
0x12cd   :  { %1419 = vtanh.f32 %v722_v19  ;;  %v1314_v21 = vmul.f32 -1.442695, %v722_v19 }
0x12cf   :  { %1421 = vpow2.f32 %v1314_v21 }
0x12d3   :  { %v1420_v20 = vpop.eup %1419 }
0x12d4   :  { %745 = vrot.lane.b32.xlu0 %v1420_v20, %s1510_s14 }
0x12d5   :  { %v1422_v22 = vpop.eup %1421 }
0x12d6   :  { %v726_v23 = vadd.f32 1.0, %v1422_v22 }
0x12d8   :  { %1423 = vrcp.f32 %v726_v23  ;;  %v738_v29 = vand.u32 2147483648, %v726_v23  ;;  %vm732_vm12 = vweird.f32 %v726_v23  ;;  %v736_v30 = vand.u32 2147483647, %v726_v23 }
0x12da   :  { %v739_v35 = vor.u32 1.1754944e-38, %v738_v29  ;;  %vm737_vm14 = vcmp.eq.f32.partialorder %v736_v30, 8.507059e+37 }
0x12de   :  { %v1424_v24 = vpop.eup %1423 }
0x12df   :  { %v728_v25 = vmul.f32 %v1424_v24, %v726_v23  ;;  %vm733_vm11 = vweird.f32 %v1424_v24 }
0x12e0   :  { %vm734_vm13 = vmor %vm732_vm12, %vm733_vm11 }
0x12e1   :  { %v729_v26 = vsub.f32 1.0, %v728_v25 }
0x12e3   :  { %v730_v27 = vmul.f32 %v1424_v24, %v729_v26 }
0x12e5   :  { %v731_v28 = vadd.f32 %v1424_v24, %v730_v27 }
0x12e7   :  { %v735_v34 = vsel %vm734_vm13, %v1424_v24, %v731_v28 }
0x12e8   :  { %v740_v37 = vsel %vm737_vm14, %v739_v35, %v735_v34 }
0x12e9   :  { %v743_v39 = vmul.f32 0.0, %v740_v37 }
0x1346   :  { %v746_v36 = vpop.permute.xlu0 %745 }
0x1347   :  { %v748_v38 = vmul.f32 %v746_v36, %v740_v37 }
0x1349   :  { %750 = vrot.lane.b32.xlu1 %v748_v38, %s1513_s2 }
0x13bb   :  { %v751_v40 = vpop.permute.xlu1 %750 }
0x13bc   :  { %v753_v41 = vadd.f32 %v751_v40, %v743_v39 }
0x13be   :  { %1425 = vtanh.f32 %v753_v41  ;;  %v805_v2 = vrot.slane %v753_v41, 6 }
0x13c4   :  { %v1426_v42 = vpop.eup %1425 }
0x13c5   :  { %756 = vrot.lane.b32.xlu2 %v1426_v42, %s1510_s14 }
0x141f   :  { %v757_v43 = vpop.permute.xlu2 %756 }
0x1420   :  { %v759_v44 = vmul.f32 %v757_v43, %v740_v37 }
0x1422   :  { %v760_v45 = vpack.c.bf16 %v759_v44, %v759_v44 }
0x1424   :  { %762 = vrot.lane.b32.xlu0 %v760_v45, %s1513_s2  ;;  %v694_v45 = vpop.f32.mrf.mxu1 }
0x1496   :  { %v763_v46 = vpop.permute.xlu0 %762 }
0x1497   :  { %1315 = vmatmul.msk.bf16.vlgmr.msra.gmra.mxu3 %vm104_vm6, %v763_v46 }
0x151a   :  { %v776_v47 = vpop.f32.mrf.mxu3 }
0x151b   :  { %v781_v3 = vrot.slane %v776_v47, 6 }
0x151d   :  { %v783_v48 = vadd.f32 %v781_v3, %v1700_v6 }
0x151f   :  { %1427 = vtanh.f32 %v783_v48  ;;  %v1316_v51 = vmul.f32 -1.442695, %v783_v48 }
0x1521   :  { %1429 = vpow2.f32 %v1316_v51 }
0x1522   :  { %v778_v49 = vpop.f32.mrf.mxu3 }
0x1525   :  { %v1428_v50 = vpop.eup %1427 }
0x1526   :  { %809 = vrot.lane.b32.xlu1 %v1428_v50, %s1510_s14 }
0x1527   :  { %v1430_v8 = vpop.eup %1429 }
0x1528   :  { %v787_v33 = vadd.f32 1.0, %v1430_v8 }
0x152a   :  { %1431 = vrcp.f32 %v787_v33  ;;  %v799_v56 = vand.u32 2147483648, %v787_v33  ;;  %vm793_vm0 = vweird.f32 %v787_v33  ;;  %v797_v57 = vand.u32 2147483647, %v787_v33 }
0x152c   :  { %v800_v59 = vor.u32 1.1754944e-38, %v799_v56  ;;  %vm798_vm3 = vcmp.eq.f32.partialorder %v797_v57, 8.507059e+37 }
0x1530   :  { %v1432_v52 = vpop.eup %1431 }
0x1531   :  { %v789_v63 = vmul.f32 %v1432_v52, %v787_v33  ;;  %vm794_vm15 = vweird.f32 %v1432_v52 }
0x1532   :  { %vm795_vm2 = vmor %vm793_vm0, %vm794_vm15 }
0x1533   :  { %v790_v53 = vsub.f32 1.0, %v789_v63 }
0x1535   :  { %v791_v54 = vmul.f32 %v1432_v52, %v790_v53 }
0x1537   :  { %v792_v55 = vadd.f32 %v1432_v52, %v791_v54 }
0x1539   :  { %v796_v58 = vsel %vm795_vm2, %v1432_v52, %v792_v55 }
0x153a   :  { %v801_v0 = vsel %vm798_vm3, %v800_v59, %v796_v58 }
0x153b   :  { %v807_v62 = vmul.f32 %v805_v2, %v801_v0 }
0x1598   :  { %v810_v60 = vpop.permute.xlu1 %809 }
0x1599   :  { %v812_v1 = vmul.f32 %v810_v60, %v801_v0 }
0x159b   :  { %814 = vrot.lane.b32.xlu2 %v812_v1, %s1513_s2 }
0x15f5   :  { %v815_v32 = vpop.permute.xlu2 %814 }
0x15f6   :  { %v817_v4 = vadd.f32 %v815_v32, %v807_v62 }
0x15f8   :  { %1433 = vtanh.f32 %v817_v4  ;;  %v870_v35 = vrot.slane %v817_v4, 6 }
0x15fe   :  { %v1434_v7 = vpop.eup %1433 }
0x15ff   :  { %820 = vrot.lane.b32.xlu0 %v1434_v7, %s1510_s14 }
0x1671   :  { %v821_v31 = vpop.permute.xlu0 %820 }
0x1672   :  { %v823_v61 = vmul.f32 %v821_v31, %v801_v0 }
0x1674   :  { %v824_v9 = vpack.c.bf16 %v823_v61, %v823_v61 }
0x1676   :  { %v826_v10 = vrot.slane %v824_v9, 1 }
0x1678   :  { %827 = vrot.lane.b32.xlu1 %v826_v10, %s1513_s2  ;;  %v1727_v10 = vadd.f32 %v1697_v17, %v694_v45 }
0x16ea   :  { %v828_v11 = vpop.permute.xlu1 %827 }
0x16eb   :  { %1317 = vmatmul.msk.bf16.vlgmr.msrb.gmra.mxu0 %vm104_vm6, %v828_v11 }
0x1768   :  { %v841_v5 = vpop.f32.mrf.mxu0 }
0x1769   :  { %v846_v12 = vrot.slane %v841_v5, 4 }
0x176b   :  { %v848_v13 = vadd.f32 %v846_v12, %v1700_v6 }
0x176d   :  { %1435 = vtanh.f32 %v848_v13  ;;  %v1318_v16 = vmul.f32 -1.442695, %v848_v13 }
0x176f   :  { %1437 = vpow2.f32 %v1318_v16 }
0x1770   :  { %v843_v14 = vpop.f32.mrf.mxu0 }
0x1773   :  { %v1436_v15 = vpop.eup %1435 }
0x1774   :  { %874 = vrot.lane.b32.xlu2 %v1436_v15, %s1510_s14 }
0x1775   :  { %v1438_v18 = vpop.eup %1437 }
0x1776   :  { %v852_v19 = vadd.f32 1.0, %v1438_v18 }
0x1778   :  { %1439 = vrcp.f32 %v852_v19  ;;  %v864_v25 = vand.u32 2147483648, %v852_v19  ;;  %vm858_vm5 = vweird.f32 %v852_v19  ;;  %v862_v26 = vand.u32 2147483647, %v852_v19 }
0x177a   :  { %v865_v28 = vor.u32 1.1754944e-38, %v864_v25  ;;  %vm863_vm12 = vcmp.eq.f32.partialorder %v862_v26, 8.507059e+37 }
0x177e   :  { %v1440_v20 = vpop.eup %1439 }
0x177f   :  { %v854_v21 = vmul.f32 %v1440_v20, %v852_v19  ;;  %vm859_vm4 = vweird.f32 %v1440_v20 }
0x1780   :  { %vm860_vm11 = vmor %vm858_vm5, %vm859_vm4 }
0x1781   :  { %v855_v22 = vsub.f32 1.0, %v854_v21 }
0x1783   :  { %v856_v23 = vmul.f32 %v1440_v20, %v855_v22 }
0x1785   :  { %v857_v24 = vadd.f32 %v1440_v20, %v856_v23 }
0x1787   :  { %v861_v27 = vsel %vm860_vm11, %v1440_v20, %v857_v24 }
0x1788   :  { %v866_v30 = vsel %vm863_vm12, %v865_v28, %v861_v27 }
0x1789   :  { %v872_v36 = vmul.f32 %v870_v35, %v866_v30 }
0x17ce   :  { %v875_v29 = vpop.permute.xlu2 %874 }
0x17cf   :  { %v877_v34 = vmul.f32 %v875_v29, %v866_v30 }
0x17d1   :  { %879 = vrot.lane.b32.xlu0 %v877_v34, %s1513_s2 }
0x1843   :  { %v880_v37 = vpop.permute.xlu0 %879 }
0x1844   :  { %v882_v38 = vadd.f32 %v880_v37, %v872_v36 }
0x1846   :  { %1441 = vtanh.f32 %v882_v38  ;;  %v935_v0 = vrot.slane %v882_v38, 6 }
0x184c   :  { %v1442_v39 = vpop.eup %1441 }
0x184d   :  { %885 = vrot.lane.b32.xlu1 %v1442_v39, %s1510_s14 }
0x18bf   :  { %v886_v40 = vpop.permute.xlu1 %885 }
0x18c0   :  { %v888_v41 = vmul.f32 %v886_v40, %v866_v30 }
0x18c2   :  { %v889_v42 = vpack.c.bf16 %v888_v41, %v888_v41 }
0x18c4   :  { %v891_v43 = vrot.slane %v889_v42, 2 }
0x18c6   :  { %892 = vrot.lane.b32.xlu2 %v891_v43, %s1513_s2 }
0x1920   :  { %v893_v44 = vpop.permute.xlu2 %892 }
0x1921   :  { %1319 = vmatmul.msk.bf16.vlgmr.msrb.gmra.mxu1 %vm104_vm6, %v893_v44 }
0x199e   :  { %v906_v46 = vpop.f32.mrf.mxu1 }
0x199f   :  { %v911_v47 = vrot.slane %v906_v46, 2 }
0x19a1   :  { %v913_v3 = vadd.f32 %v911_v47, %v1700_v6 }
0x19a3   :  { %1443 = vtanh.f32 %v913_v3  ;;  %v1320_v50 = vmul.f32 -1.442695, %v913_v3 }
0x19a5   :  { %1445 = vpow2.f32 %v1320_v50 }
0x19a6   :  { %v908_v48 = vpop.f32.mrf.mxu1 }
0x19a9   :  { %v1444_v49 = vpop.eup %1443 }
0x19aa   :  { %939 = vrot.lane.b32.xlu0 %v1444_v49, %s1510_s14 }
0x19ab   :  { %v1446_v51 = vpop.eup %1445 }
0x19ac   :  { %v917_v8 = vadd.f32 1.0, %v1446_v51 }
0x19ae   :  { %1447 = vrcp.f32 %v917_v8  ;;  %v929_v55 = vand.u32 2147483648, %v917_v8  ;;  %vm923_vm14 = vweird.f32 %v917_v8  ;;  %v927_v56 = vand.u32 2147483647, %v917_v8 }
0x19b0   :  { %v930_v57 = vor.u32 1.1754944e-38, %v929_v55  ;;  %vm928_vm0 = vcmp.eq.f32.partialorder %v927_v56, 8.507059e+37 }
0x19b4   :  { %v1448_v33 = vpop.eup %1447 }
0x19b5   :  { %v919_v52 = vmul.f32 %v1448_v33, %v917_v8  ;;  %vm924_vm13 = vweird.f32 %v1448_v33 }
0x19b6   :  { %vm925_vm15 = vmor %vm923_vm14, %vm924_vm13 }
0x19b7   :  { %v920_v63 = vsub.f32 1.0, %v919_v52 }
0x19b9   :  { %v921_v53 = vmul.f32 %v1448_v33, %v920_v63 }
0x19bb   :  { %v922_v54 = vadd.f32 %v1448_v33, %v921_v53 }
0x19bd   :  { %v926_v6 = vsel %vm925_vm15, %v1448_v33, %v922_v54 }
0x19be   :  { %v931_v59 = vsel %vm928_vm0, %v930_v57, %v926_v6 }
0x19bf   :  { %v937_v1 = vmul.f32 %v935_v0, %v931_v59 }
0x1a1c   :  { %v940_v58 = vpop.permute.xlu0 %939 }
0x1a1d   :  { %v942_v60 = vmul.f32 %v940_v58, %v931_v59 }
0x1a1f   :  { %944 = vrot.lane.b32.xlu1 %v942_v60, %s1513_s2 }
0x1a91   :  { %v945_v2 = vpop.permute.xlu1 %944 }
0x1a92   :  { %v947_v62 = vadd.f32 %v945_v2, %v937_v1 }
0x1a94   :  { %1449 = vtanh.f32 %v947_v62  ;;  %v997_v29 = vrot.slane %v947_v62, 6 }
0x1a9a   :  { %v1450_v32 = vpop.eup %1449 }
0x1a9b   :  { %950 = vrot.lane.b32.xlu2 %v1450_v32, %s1510_s14 }
0x1af5   :  { %v951_v4 = vpop.permute.xlu2 %950 }
0x1af6   :  { %v953_v7 = vmul.f32 %v951_v4, %v931_v59 }
0x1af8   :  { %v954_v31 = vpack.c.bf16 %v953_v7, %v953_v7 }
0x1afa   :  { %v956_v61 = vrot.slane %v954_v31, 3 }
0x1afc   :  { %957 = vrot.lane.b32.xlu0 %v956_v61, %s1513_s2 }
0x1b6e   :  { %v958_v9 = vpop.permute.xlu0 %957 }
0x1b6f   :  { %1321 = vmatmul.msk.bf16.vlgmr.msrb.gmra.mxu2 %vm104_vm6, %v958_v9 }
0x1bf2   :  { %v971_v11 = vpop.f32.mrf.mxu2 }
0x1bf3   :  { %v975_v5 = vadd.f32 %v971_v11, %v1727_v10 }
0x1bf5   :  { %1451 = vtanh.f32 %v975_v5  ;;  %v1322_v14 = vmul.f32 -1.442695, %v975_v5 }
0x1bf7   :  { %1453 = vpow2.f32 %v1322_v14 }
0x1bfa   :  { %v973_v12 = vpop.f32.mrf.mxu2 }
0x1bfb   :  { %v1452_v13 = vpop.eup %1451 }
0x1bfc   :  { %1001 = vrot.lane.b32.xlu1 %v1452_v13, %s1510_s14 }
0x1bfd   :  { %v1454_v15 = vpop.eup %1453 }
0x1bfe   :  { %v979_v16 = vadd.f32 1.0, %v1454_v15 }
0x1c00   :  { %1455 = vrcp.f32 %v979_v16  ;;  %v991_v17 = vand.u32 2147483648, %v979_v16  ;;  %vm985_vm3 = vweird.f32 %v979_v16  ;;  %v989_v23 = vand.u32 2147483647, %v979_v16 }
0x1c02   :  { %v992_v25 = vor.u32 1.1754944e-38, %v991_v17  ;;  %vm990_vm5 = vcmp.eq.f32.partialorder %v989_v23, 8.507059e+37 }
0x1c06   :  { %v1456_v18 = vpop.eup %1455 }
0x1c07   :  { %v981_v19 = vmul.f32 %v1456_v18, %v979_v16  ;;  %vm986_vm2 = vweird.f32 %v1456_v18 }
0x1c08   :  { %vm987_vm4 = vmor %vm985_vm3, %vm986_vm2 }
0x1c09   :  { %v982_v20 = vsub.f32 1.0, %v981_v19 }
0x1c0b   :  { %v983_v21 = vmul.f32 %v1456_v18, %v982_v20 }
0x1c0d   :  { %v984_v22 = vadd.f32 %v1456_v18, %v983_v21 }
0x1c0f   :  { %v988_v24 = vsel %vm987_vm4, %v1456_v18, %v984_v22 }
0x1c10   :  { %v993_v27 = vsel %vm990_vm5, %v992_v25, %v988_v24 }
0x1c11   :  { %v999_v30 = vmul.f32 %v997_v29, %v993_v27 }
0x1c6e   :  { %v1002_v26 = vpop.permute.xlu1 %1001 }
0x1c6f   :  { %v1004_v28 = vmul.f32 %v1002_v26, %v993_v27 }
0x1c71   :  { %1006 = vrot.lane.b32.xlu2 %v1004_v28, %s1513_s2 }
0x1ccb   :  { %v1007_v34 = vpop.permute.xlu2 %1006 }
0x1ccc   :  { %v1009_v35 = vadd.f32 %v1007_v34, %v999_v30 }
0x1cce   :  { %1457 = vtanh.f32 %v1009_v35  ;;  %v1066_v6 = vrot.slane %v1009_v35, 6 }
0x1cd4   :  { %v1458_v36 = vpop.eup %1457 }
0x1cd5   :  { %1012 = vrot.lane.b32.xlu0 %v1458_v36, %s1510_s14 }
0x1d47   :  { %v1013_v37 = vpop.permute.xlu0 %1012 }
0x1d48   :  { %v1733_v38 = vmul.f32 %v1013_v37, %v993_v27 }
0x1d4a   :  { %v1021_v39 = vpack.c.bf16 %v1733_v38, %v1733_v38 }
0x1d4c   :  { %1023 = vrot.lane.b32.xlu1 %v1021_v39, %s1513_s2 }
0x1dbe   :  { %v1024_v40 = vpop.permute.xlu1 %1023 }
0x1dbf   :  { %1323 = vmatmul.msk.bf16.vlgmr.msrb.gmra.mxu3 %vm104_vm6, %v1024_v40 }
0x1e42   :  { %v1037_v41 = vpop.f32.mrf.mxu3 }
0x1e43   :  { %v1042_v42 = vrot.slane %v1037_v41, 6 }
0x1e45   :  { %v1044_v43 = vadd.f32 %v1042_v42, %v1727_v10 }
0x1e47   :  { %1459 = vtanh.f32 %v1044_v43  ;;  %v1324_v46 = vmul.f32 -1.442695, %v1044_v43 }
0x1e49   :  { %1461 = vpow2.f32 %v1324_v46 }
0x1e4a   :  { %v1039_v44 = vpop.f32.mrf.mxu3 }
0x1e4d   :  { %v1460_v45 = vpop.eup %1459 }
0x1e4e   :  { %1070 = vrot.lane.b32.xlu2 %v1460_v45, %s1510_s14 }
0x1e4f   :  { %v1462_v47 = vpop.eup %1461 }
0x1e50   :  { %v1048_v3 = vadd.f32 1.0, %v1462_v47 }
0x1e52   :  { %1463 = vrcp.f32 %v1048_v3  ;;  %v1060_v33 = vand.u32 2147483648, %v1048_v3  ;;  %vm1054_vm12 = vweird.f32 %v1048_v3  ;;  %v1058_v52 = vand.u32 2147483647, %v1048_v3 }
0x1e54   :  { %v1061_v53 = vor.u32 1.1754944e-38, %v1060_v33  ;;  %vm1059_vm14 = vcmp.eq.f32.partialorder %v1058_v52, 8.507059e+37 }
0x1e58   :  { %v1464_v48 = vpop.eup %1463 }
0x1e59   :  { %v1050_v49 = vmul.f32 %v1464_v48, %v1048_v3  ;;  %vm1055_vm11 = vweird.f32 %v1464_v48 }
0x1e5a   :  { %vm1056_vm13 = vmor %vm1054_vm12, %vm1055_vm11 }
0x1e5b   :  { %v1051_v50 = vsub.f32 1.0, %v1050_v49 }
0x1e5d   :  { %v1052_v51 = vmul.f32 %v1464_v48, %v1051_v50 }
0x1e5f   :  { %v1053_v8 = vadd.f32 %v1464_v48, %v1052_v51 }
0x1e61   :  { %v1057_v63 = vsel %vm1056_vm13, %v1464_v48, %v1053_v8 }
0x1e62   :  { %v1062_v55 = vsel %vm1059_vm14, %v1061_v53, %v1057_v63 }
0x1e63   :  { %v1068_v57 = vmul.f32 %v1066_v6, %v1062_v55 }
0x1ea8   :  { %v1071_v54 = vpop.permute.xlu2 %1070 }
0x1ea9   :  { %v1073_v56 = vmul.f32 %v1071_v54, %v1062_v55 }
0x1eab   :  { %1075 = vrot.lane.b32.xlu0 %v1073_v56, %s1513_s2 }
0x1f1d   :  { %v1076_v58 = vpop.permute.xlu0 %1075 }
0x1f1e   :  { %v1078_v59 = vadd.f32 %v1076_v58, %v1068_v57 }
0x1f20   :  { %1465 = vtanh.f32 %v1078_v59  ;;  %v1136_v25 = vrot.slane %v1078_v59, 6  ;;  %v1339_v59 = vld [vmem:[%s1790_s7 + $0x8] sm:$0xff] }
0x1f21   :  { %1256 = vmatpush.bf16.msra.mxu2 %v1339_v59 }
0x1f26   :  { %v1466_v60 = vpop.eup %1465 }
0x1f27   :  { %1081 = vrot.lane.b32.xlu1 %v1466_v60, %s1510_s14 }
0x1f99   :  { %v1082_v0 = vpop.permute.xlu1 %1081 }
0x1f9a   :  { %v1743_v1 = vmul.f32 %v1082_v0, %v1062_v55 }
0x1f9c   :  { %v1090_v2 = vpack.c.bf16 %v1743_v1, %v1743_v1 }
0x1f9e   :  { %v1092_v62 = vrot.slane %v1090_v2, 1  ;;  %v1338_v2 = vld [vmem:[%s1790_s7] sm:$0xff] }
0x1f9f   :  { %1257 = vmatpush.bf16.msra.mxu2 %v1338_v2 }
0x1fa0   :  { %1093 = vrot.lane.b32.xlu2 %v1092_v62, %s1513_s2 }
0x1ffa   :  { %v1094_v32 = vpop.permute.xlu2 %1093 }
0x1ffb   :  { %1325 = vmatmul.msk.bf16.vlgmr.msra.gmra.mxu0 %vm104_vm6, %v1094_v32 }
0x2078   :  { %v1107_v4 = vpop.f32.mrf.mxu0 }
0x2079   :  { %v1112_v7 = vrot.slane %v1107_v4, 4 }
0x207b   :  { %v1114_v31 = vadd.f32 %v1112_v7, %v1727_v10  ;;  %v1354_v7 = vld [vmem:[%s1791_s8] ss:$0 sm:$0xff] }
0x207d   :  { %1467 = vtanh.f32 %v1114_v31  ;;  %v1326_v11 = vmul.f32 -1.442695, %v1114_v31 }
0x207f   :  { %1469 = vpow2.f32 %v1326_v11 }
0x2080   :  { %v1109_v61 = vpop.f32.mrf.mxu0 }
0x2083   :  { %v1468_v9 = vpop.eup %1467 }
0x2084   :  { %1140 = vrot.lane.b32.xlu0 %v1468_v9, %s1510_s14 }
0x2085   :  { %v1470_v5 = vpop.eup %1469 }
0x2086   :  { %v1118_v12 = vadd.f32 1.0, %v1470_v5 }
0x2088   :  { %1471 = vrcp.f32 %v1118_v12  ;;  %v1130_v19 = vand.u32 2147483648, %v1118_v12  ;;  %vm1124_vm0 = vweird.f32 %v1118_v12  ;;  %v1128_v20 = vand.u32 2147483647, %v1118_v12 }
0x208a   :  { %v1131_v22 = vor.u32 1.1754944e-38, %v1130_v19  ;;  %vm1129_vm3 = vcmp.eq.f32.partialorder %v1128_v20, 8.507059e+37 }
0x208e   :  { %v1472_v13 = vpop.eup %1471 }
0x208f   :  { %v1120_v14 = vmul.f32 %v1472_v13, %v1118_v12  ;;  %vm1125_vm15 = vweird.f32 %v1472_v13 }
0x2090   :  { %vm1126_vm2 = vmor %vm1124_vm0, %vm1125_vm15 }
0x2091   :  { %v1121_v15 = vsub.f32 1.0, %v1120_v14 }
0x2093   :  { %v1122_v16 = vmul.f32 %v1472_v13, %v1121_v15 }
0x2095   :  { %v1123_v18 = vadd.f32 %v1472_v13, %v1122_v16 }
0x2097   :  { %v1127_v21 = vsel %vm1126_vm2, %v1472_v13, %v1123_v18 }
0x2098   :  { %v1132_v23 = vsel %vm1129_vm3, %v1131_v22, %v1127_v21 }
0x2099   :  { %v1138_v26 = vmul.f32 %v1136_v25, %v1132_v23 }
0x20f6   :  { %v1141_v17 = vpop.permute.xlu0 %1140 }
0x20f7   :  { %v1143_v24 = vmul.f32 %v1141_v17, %v1132_v23 }
0x20f9   :  { %1145 = vrot.lane.b32.xlu1 %v1143_v24, %s1513_s2 }
0x216b   :  { %v1146_v27 = vpop.permute.xlu1 %1145 }
0x216c   :  { %v1148_v28 = vadd.f32 %v1146_v27, %v1138_v26 }
0x216e   :  { %1473 = vtanh.f32 %v1148_v28  ;;  %v1206_v54 = vrot.slane %v1148_v28, 6 }
0x2174   :  { %v1474_v29 = vpop.eup %1473 }
0x2175   :  { %1151 = vrot.lane.b32.xlu2 %v1474_v29, %s1510_s14 }
0x21cf   :  { %v1152_v30 = vpop.permute.xlu2 %1151 }
0x21d0   :  { %v1154_v34 = vmul.f32 %v1152_v30, %v1132_v23 }
0x21d2   :  { %v1160_v35 = vpack.c.bf16 %v1154_v34, %v1154_v34 }
0x21d4   :  { %v1162_v36 = vrot.slane %v1160_v35, 2 }
0x21d6   :  { %1163 = vrot.lane.b32.xlu0 %v1162_v36, %s1513_s2 }
0x2248   :  { %v1164_v37 = vpop.permute.xlu0 %1163 }
0x2249   :  { %1327 = vmatmul.msk.bf16.vlgmr.msra.gmra.mxu1 %vm104_vm6, %v1164_v37 }
0x22c6   :  { %v1177_v39 = vpop.f32.mrf.mxu1 }
0x22c7   :  { %v1182_v40 = vrot.slane %v1177_v39, 2 }
0x22c9   :  { %v1184_v41 = vadd.f32 %v1182_v40, %v1727_v10 }
0x22cb   :  { %1475 = vtanh.f32 %v1184_v41  ;;  %v1328_v44 = vmul.f32 -1.442695, %v1184_v41 }
0x22cd   :  { %1477 = vpow2.f32 %v1328_v44 }
0x22ce   :  { %v1179_v42 = vpop.f32.mrf.mxu1 }
0x22d1   :  { %v1476_v43 = vpop.eup %1475 }
0x22d2   :  { %1210 = vrot.lane.b32.xlu1 %v1476_v43, %s1510_s14 }
0x22d3   :  { %v1478_v45 = vpop.eup %1477 }
0x22d4   :  { %v1188_v46 = vadd.f32 1.0, %v1478_v45 }
0x22d6   :  { %1479 = vrcp.f32 %v1188_v46  ;;  %v1200_v10 = vand.u32 2147483648, %v1188_v46  ;;  %vm1194_vm5 = vweird.f32 %v1188_v46  ;;  %v1198_v51 = vand.u32 2147483647, %v1188_v46 }
0x22d8   :  { %v1201_v33 = vor.u32 1.1754944e-38, %v1200_v10  ;;  %vm1199_vm12 = vcmp.eq.f32.partialorder %v1198_v51, 8.507059e+37 }
0x22da   :  { %1017 = vrot.lane.b32.xlu1 %v1733_v38, %s1513_s2 }
0x22dc   :  { %v1480_v47 = vpop.eup %1479 }
0x22dd   :  { %v1190_v3 = vmul.f32 %v1480_v47, %v1188_v46  ;;  %vm1195_vm4 = vweird.f32 %v1480_v47 }
0x22de   :  { %vm1196_vm11 = vmor %vm1194_vm5, %vm1195_vm4 }
0x22df   :  { %v1191_v48 = vsub.f32 1.0, %v1190_v3 }
0x22e1   :  { %v1192_v49 = vmul.f32 %v1480_v47, %v1191_v48 }
0x22e3   :  { %v1193_v50 = vadd.f32 %v1480_v47, %v1192_v49 }
0x22e5   :  { %v1197_v8 = vsel %vm1196_vm11, %v1480_v47, %v1193_v50 }
0x22e6   :  { %v1202_v38 = vsel %vm1199_vm12, %v1201_v33, %v1197_v8 }
0x22e7   :  { %v1208_v55 = vmul.f32 %v1206_v54, %v1202_v38 }
0x2344   :  { %v1211_v52 = vpop.permute.xlu1 %1210 }
0x2345   :  { %v1213_v63 = vmul.f32 %v1211_v52, %v1202_v38 }
0x2347   :  { %1215 = vrot.lane.b32.xlu2 %v1213_v63, %s1513_s2 }
0x234c   :  { %v1018_v53 = vpop.permute.xlu1 %1017 }
0x234d   :  { %1020 = vst.msk [vmem:[#allocation2 + $0x8] sm:$0x3] %vm163_vm7, %v1018_v53 }
0x234f   :  { %1086 = vrot.lane.b32.xlu2 %v1743_v1, %s1513_s2 }
0x23a1   :  { %v1216_v56 = vpop.permute.xlu2 %1215 }
0x23a2   :  { %v1218_v6 = vadd.f32 %v1216_v56, %v1208_v55 }
0x23a4   :  { %1481 = vtanh.f32 %v1218_v6 }
0x23a9   :  { %v1087_v57 = vpop.permute.xlu2 %1086 }
0x23aa   :  { %v1482_v58 = vpop.eup %1481  ;;  %1089 = vst.msk [vmem:[#allocation2 + $0x8] sm:$0xc] %vm233_vm10, %v1087_v57 }
0x23ab   :  { %1221 = vrot.lane.b32.xlu0 %v1482_v58, %s1510_s14 }
0x23b3   :  { %1156 = vrot.lane.b32.xlu0 %v1154_v34, %s1513_s2 }
0x241d   :  { %v1222_v60 = vpop.permute.xlu0 %1221 }
0x241e   :  { %v1224_v0 = vmul.f32 %v1222_v60, %v1202_v38 }
0x2420   :  { %1226 = vrot.lane.b32.xlu1 %v1224_v0, %s1513_s2 }
0x2425   :  { %v1157_v1 = vpop.permute.xlu0 %1156 }
0x2426   :  { %1159 = vst.msk [vmem:[#allocation2 + $0x8] sm:$0x30] %vm304_vm9, %v1157_v1 }
0x2492   :  { %v1227_v62 = vpop.permute.xlu1 %1226 }
0x2493   :  { %1229 = vst.msk [vmem:[#allocation2 + $0x8] sm:$0xc0] %vm375_vm8, %v1227_v62 }
0x249a   :  { %v1230_v32 = vld [vmem:[#allocation2 + $0x8] sm:$0xff] }
0x249b   :  { %v1231_v4 = vpack.c.bf16 %v1230_v32, %v1230_v32 }
0x249d   :  { %1337 = vmatmul.msk.bf16.vlgmr.msra.gmra.mxu2 %vm104_vm6, %v1231_v4 }
0x2520   :  { %v1259_v31 = vpop.f32.mrf.mxu2 }
0x2521   :  { %v1260_v61 = vadd.f32 %v1354_v7, %v1259_v31 }
0x2523   :  { %1263 = vst.msk [vmem:[%s1792_s9] sm:$0xff] %vm70_vm1, %v1260_v61 }
0x2528   :  { %v1261_v9 = vpop.f32.mrf.mxu2 }
0x2529   :  { %1268 = vsyncpa [#allocation4], 1 }

</bundles_post_ra>
